<compile_context>
chip_gen: v5e
topology: v5e:2x2
jax: 0.10.0
libtpu: 0.0.40
codegen_flags: <defaults>
</compile_context>

<pallas_src>
import jax
import jax.numpy as jnp
from jax.experimental import pallas as pl
from jax.experimental.pallas import tpu as pltpu


def critic_kernel(x_ref, w1_ref, b1_ref, w2_ref, b2_ref, wq_ref, bq_ref,
                  out_ref):
    # x_ref : [S+A, bm] f32 tile of the concatenated input (batch on lanes).
    # w*_ref: PyTorch-layout (out, in) bf16 weights; b*_ref: (out, 1) f32.
    # bq_ref: (1,) f32 scalar in SMEM.  out_ref: [1, bm] f32 (lane-dense).
    x = x_ref[...].astype(jnp.bfloat16)

    # fc1: single MXU push on the (virtually concatenated) input, f32 bias
    # add, then ReLU in bf16 (cast is needed for the next matmul anyway).
    h1 = jnp.dot(w1_ref[...], x, preferred_element_type=jnp.float32) + b1_ref[...]
    h1 = jnp.maximum(h1.astype(jnp.bfloat16), 0)

    # fc2 + ReLU, same recipe.
    h2 = jnp.dot(w2_ref[...], h1, preferred_element_type=jnp.float32) + b2_ref[...]
    h2 = jnp.maximum(h2.astype(jnp.bfloat16), 0)

    # q head on the (otherwise idle) MXU: [1,FC2] @ [FC2,bm] -> [1,bm].
    q = jnp.dot(wq_ref[...], h2, preferred_element_type=jnp.float32)
    out_ref[...] = q + bq_ref[0]


def critic_forward(state, action, params, *, block_m=2048, min_grid_steps=1):
    """Full critic forward pass in one gridded, pipelined Pallas call.

    block_m:        max batch rows per grid step (2048 fits v5e scoped VMEM).
    min_grid_steps: set to 2 on v7x so the 'parallel' batch axis shards across
                    both TensorCores; leave at 1 on single-TC v5e/v6e.
    """
    B, S = state.shape
    A = action.shape[1]
    w1, b1, w2, b2, wq, bq = params
    FC1 = w1.shape[0]
    FC2 = w2.shape[0]
    K = S + A

    # ---- batch tile selection ------------------------------------------------
    bm = min(block_m, B)
    if min_grid_steps > 1 and B > 128:
        bm = min(bm, max(128, pl.cdiv(pl.cdiv(B, min_grid_steps), 128) * 128))
    if bm < B:
        bm = max(128, (bm // 128) * 128)   # tiled lane dim must be 128-aligned
    Bp = pl.cdiv(B, bm) * bm
    grid = (Bp // bm,)

    # cat([state, action], 1) (the torch concat, fused by XLA), pad the batch
    # to whole tiles, and go feature-major so the batch rides the lane axis.
    x = jnp.concatenate([state, action], axis=1)           # [B, S+A]
    if Bp != B:
        x = jnp.pad(x, ((0, Bp - B), (0, 0)))
    xt = x.T                                               # [S+A, Bp]

    def streamed(rows):                    # per-grid-step batch tile
        return pl.BlockSpec((rows, bm), lambda i: (0, i))

    def pinned(shape):                     # constant index -> VMEM-resident
        return pl.BlockSpec(shape, lambda i: (0, 0))

    flops = 2 * Bp * (K * FC1 + FC1 * FC2 + FC2)
    bytes_accessed = (4 * Bp * K + 4 * Bp                   # input + output
                      + 2 * (K * FC1 + FC1 * FC2 + FC2)     # bf16 weights
                      + 4 * (FC1 + FC2 + 1))                # f32 biases

    out = pl.pallas_call(
        critic_kernel,
        out_shape=jax.ShapeDtypeStruct((1, Bp), jnp.float32),
        grid=grid,
        in_specs=[
            streamed(K),                                     # x^T tile
            pinned((FC1, K)),                                # fc1 weight (out,in)
            pinned((FC1, 1)),                                # fc1 bias column
            pinned((FC2, FC1)),                              # fc2 weight
            pinned((FC2, 1)),                                # fc2 bias column
            pinned((1, FC2)),                                # q weight row
            pl.BlockSpec(memory_space=pltpu.MemorySpace.SMEM),  # q bias scalar
        ],
        out_specs=streamed(1),                               # lane-dense [1,bm]
        compiler_params=pltpu.CompilerParams(
            dimension_semantics=("parallel",)),
        cost_estimate=pl.CostEstimate(flops=flops, transcendentals=0,
                                      bytes_accessed=bytes_accessed),
    )(xt, w1, b1, w2, b2, wq, bq)

    return out[0, :B].reshape(B, 1)


def init_params(key, input_dims, n_actions, fc1_dims=256, fc2_dims=256):
    """torch.nn.Linear default init (uniform +-1/sqrt(fan_in)), kept in
    PyTorch (out, in) layout.  Weights are bf16 (MXU inputs); biases stay f32
    as (out, 1) columns (broadcast over the lane/batch axis in-kernel); the
    q bias is a length-1 f32 vector destined for SMEM."""
    in1 = input_dims + n_actions
    ks = jax.random.split(key, 6)

    def lin(kw, kb, fan_in, fan_out):
        bound = float(fan_in) ** -0.5
        w = jax.random.uniform(kw, (fan_out, fan_in), jnp.float32, -bound, bound)
        b = jax.random.uniform(kb, (fan_out,), jnp.float32, -bound, bound)
        return w, b

    w1, b1 = lin(ks[0], ks[1], in1, fc1_dims)
    w2, b2 = lin(ks[2], ks[3], fc1_dims, fc2_dims)
    wq, bq = lin(ks[4], ks[5], fc2_dims, 1)
    return (w1.astype(jnp.bfloat16), b1.reshape(fc1_dims, 1),
            w2.astype(jnp.bfloat16), b2.reshape(fc2_dims, 1),
            wq.astype(jnp.bfloat16), bq)


def critic_reference(state, action, params):
    """Pure-JAX reference with the kernel's exact precision choices
    (bf16 MXU inputs, f32 accumulation, f32 bias add, bf16 ReLU)."""
    w1, b1, w2, b2, wq, bq = params
    xt = jnp.concatenate([state, action], axis=1).T.astype(jnp.bfloat16)
    h1 = jnp.dot(w1, xt, preferred_element_type=jnp.float32) + b1
    h1 = jnp.maximum(h1.astype(jnp.bfloat16), 0)
    h2 = jnp.dot(w2, h1, preferred_element_type=jnp.float32) + b2
    h2 = jnp.maximum(h2.astype(jnp.bfloat16), 0)
    q = jnp.dot(wq, h2, preferred_element_type=jnp.float32) + bq[0]
    return q.T                                             # [B, 1]


if __name__ == "__main__":
    # Module-consistent shapes: input_dims=(16,), n_actions=4, fc1=fc2=256.
    S, A = 16, 4
    FC1, FC2 = 256, 256

    key = jax.random.PRNGKey(0)
    k_state, k_action, k_params = jax.random.split(key, 3)
    params = init_params(k_params, S, A, FC1, FC2)

    B = 256
    state = jax.random.normal(k_state, (B, S), jnp.float32)
    action = jax.random.normal(k_action, (B, A), jnp.float32)
    q_ref = critic_reference(state, action, params)

    # Default path: one 256-row tile, grid=(1,) (best on single-TC v5e/v6e).
    q = jax.block_until_ready(critic_forward(state, action, params))
    assert q.shape == (B, 1), q.shape
    assert jnp.allclose(q, q_ref, atol=2e-3, rtol=2e-3)

    # v7x-style path: min_grid_steps=2 -> two 128-row tiles, grid=(2,), so the
    # "parallel" batch axis can shard across both TensorCores.
    q2 = jax.block_until_ready(
        critic_forward(state, action, params, min_grid_steps=2))
    assert q2.shape == (B, 1), q2.shape
    assert jnp.allclose(q2, q_ref, atol=2e-3, rtol=2e-3)

    # Ragged batch exercising padding + a multi-step grid: B=300, 128-row tiles.
    Br = 300
    kr1, kr2 = jax.random.split(jax.random.PRNGKey(1))
    state_r = jax.random.normal(kr1, (Br, S), jnp.float32)
    action_r = jax.random.normal(kr2, (Br, A), jnp.float32)
    qr = jax.block_until_ready(
        critic_forward(state_r, action_r, params, block_m=128))
    assert qr.shape == (Br, 1), qr.shape
    assert jnp.allclose(qr, critic_reference(state_r, action_r, params),
                        atol=2e-3, rtol=2e-3)

    # Tiny batch (SAC action-selection): B=2 -> one full (non-tiled) block.
    qs = jax.block_until_ready(critic_forward(state[:2], action[:2], params))
    assert qs.shape == (2, 1), qs.shape
    assert jnp.allclose(qs, q_ref[:2], atol=2e-3, rtol=2e-3)

    print("KERNEL_OK")
</pallas_src>

<mosaic_0001>
module attributes {stable_mosaic.version = 11 : i64} {
  func.func @critic_kernel(%arg0: i32, %arg1: memref<20x256xf32, #tpu.memory_space<vmem>>, %arg2: memref<256x20xbf16, #tpu.memory_space<vmem>>, %arg3: memref<256x1xf32, #tpu.memory_space<vmem>>, %arg4: memref<256x256xbf16, #tpu.memory_space<vmem>>, %arg5: memref<256x1xf32, #tpu.memory_space<vmem>>, %arg6: memref<1x256xbf16, #tpu.memory_space<vmem>>, %arg7: memref<1xf32, #tpu.memory_space<smem>>, %arg8: memref<1x256xf32, #tpu.memory_space<vmem>>) attributes {dimension_semantics = [#tpu.dimension_semantics<parallel>], iteration_bounds = array<i64: 1>, scalar_prefetch = 0 : i64, scratch_operands = 0 : i64, tpu.core_type = #tpu.core_type<tc>, window_params = [{transform_indices = @transform_0, window_bounds = array<i64: 20, 256>}, {pipeline_mode = #tpu.pipeline_mode<synchronous>, transform_indices = @transform_1, window_bounds = array<i64: 256, 20>}, {pipeline_mode = #tpu.pipeline_mode<synchronous>, transform_indices = @transform_2, window_bounds = array<i64: 256, 1>}, {pipeline_mode = #tpu.pipeline_mode<synchronous>, transform_indices = @transform_3, window_bounds = array<i64: 256, 256>}, {pipeline_mode = #tpu.pipeline_mode<synchronous>, transform_indices = @transform_4, window_bounds = array<i64: 256, 1>}, {pipeline_mode = #tpu.pipeline_mode<synchronous>, transform_indices = @transform_5, window_bounds = array<i64: 1, 256>}, {transform_indices = @transform_6, window_bounds = array<i64: 1>}, {transform_indices = @transform_7, window_bounds = array<i64: 1, 256>}]} {
    %c0 = arith.constant 0 : index
    %c0_0 = arith.constant 0 : index
    %0 = vector.load %arg1[%c0, %c0_0] : memref<20x256xf32, #tpu.memory_space<vmem>>, vector<20x256xf32>
    %1 = arith.truncf %0 : vector<20x256xf32> to vector<20x256xbf16>
    %c0_1 = arith.constant 0 : index
    %c0_2 = arith.constant 0 : index
    %2 = vector.load %arg2[%c0_1, %c0_2] : memref<256x20xbf16, #tpu.memory_space<vmem>>, vector<256x20xbf16>
    %cst = arith.constant dense<0.000000e+00> : vector<256x256xf32>
    %3 = tpu.matmul %2, %1, %cst {dimension_numbers = #tpu.dot_dimension_numbers<[1], [0], [0], [1], [0, 0, 1, 1], [], []>} : vector<256x20xbf16>, vector<20x256xbf16>, vector<256x256xf32> -> vector<256x256xf32>
    %c0_3 = arith.constant 0 : index
    %c0_4 = arith.constant 0 : index
    %4 = vector.load %arg3[%c0_3, %c0_4] : memref<256x1xf32, #tpu.memory_space<vmem>>, vector<256x1xf32>
    %5 = vector.broadcast %4 : vector<256x1xf32> to vector<256x256xf32>
    %6 = arith.addf %3, %5 : vector<256x256xf32>
    %7 = arith.truncf %6 : vector<256x256xf32> to vector<256x256xbf16>
    %cst_5 = arith.constant 0.000000e+00 : bf16
    %8 = vector.broadcast %cst_5 : bf16 to vector<256x256xbf16>
    %9 = arith.maximumf %7, %8 : vector<256x256xbf16>
    %c0_6 = arith.constant 0 : index
    %c0_7 = arith.constant 0 : index
    %10 = vector.load %arg4[%c0_6, %c0_7] : memref<256x256xbf16, #tpu.memory_space<vmem>>, vector<256x256xbf16>
    %cst_8 = arith.constant dense<0.000000e+00> : vector<256x256xf32>
    %11 = tpu.matmul %10, %9, %cst_8 {dimension_numbers = #tpu.dot_dimension_numbers<[1], [0], [0], [1], [0, 0, 1, 1], [], []>} : vector<256x256xbf16>, vector<256x256xbf16>, vector<256x256xf32> -> vector<256x256xf32>
    %c0_9 = arith.constant 0 : index
    %c0_10 = arith.constant 0 : index
    %12 = vector.load %arg5[%c0_9, %c0_10] : memref<256x1xf32, #tpu.memory_space<vmem>>, vector<256x1xf32>
    %13 = vector.broadcast %12 : vector<256x1xf32> to vector<256x256xf32>
    %14 = arith.addf %11, %13 : vector<256x256xf32>
    %15 = arith.truncf %14 : vector<256x256xf32> to vector<256x256xbf16>
    %cst_11 = arith.constant 0.000000e+00 : bf16
    %16 = vector.broadcast %cst_11 : bf16 to vector<256x256xbf16>
    %17 = arith.maximumf %15, %16 : vector<256x256xbf16>
    %c0_12 = arith.constant 0 : index
    %c0_13 = arith.constant 0 : index
    %18 = vector.load %arg6[%c0_12, %c0_13] : memref<1x256xbf16, #tpu.memory_space<vmem>>, vector<1x256xbf16>
    %cst_14 = arith.constant dense<0.000000e+00> : vector<1x256xf32>
    %19 = tpu.matmul %18, %17, %cst_14 {dimension_numbers = #tpu.dot_dimension_numbers<[1], [0], [0], [1], [0, 0, 1, 1], [], []>} : vector<1x256xbf16>, vector<256x256xbf16>, vector<1x256xf32> -> vector<1x256xf32>
    %c0_15 = arith.constant 0 : index
    %20 = memref.load %arg7[%c0_15] : memref<1xf32, #tpu.memory_space<smem>>
    %21 = vector.broadcast %20 : f32 to vector<1x256xf32>
    %22 = arith.addf %19, %21 : vector<1x256xf32>
    %c0_16 = arith.constant 0 : index
    %c0_17 = arith.constant 0 : index
    %23 = vector.load %arg8[%c0_16, %c0_17] : memref<1x256xf32, #tpu.memory_space<vmem>>, vector<1x256xf32>
    tpu.vector_store %arg8[%c0_16, %c0_17], %22 {strides = array<i32>} : memref<1x256xf32, #tpu.memory_space<vmem>>, vector<1x256xf32>,
    return
  }
  func.func @transform_0(%arg0: i32) -> (i32, i32) {
    %c0_i32 = arith.constant 0 : i32
    %c0_i32_0 = arith.constant 0 : i32
    return %c0_i32, %arg0 : i32, i32
  }
  func.func @transform_1(%arg0: i32) -> (i32, i32) {
    %c0_i32 = arith.constant 0 : i32
    %c0_i32_0 = arith.constant 0 : i32
    %c0_i32_1 = arith.constant 0 : i32
    return %c0_i32, %c0_i32_0 : i32, i32
  }
  func.func @transform_2(%arg0: i32) -> (i32, i32) {
    %c0_i32 = arith.constant 0 : i32
    %c0_i32_0 = arith.constant 0 : i32
    %c0_i32_1 = arith.constant 0 : i32
    return %c0_i32, %c0_i32_0 : i32, i32
  }
  func.func @transform_3(%arg0: i32) -> (i32, i32) {
    %c0_i32 = arith.constant 0 : i32
    %c0_i32_0 = arith.constant 0 : i32
    %c0_i32_1 = arith.constant 0 : i32
    return %c0_i32, %c0_i32_0 : i32, i32
  }
  func.func @transform_4(%arg0: i32) -> (i32, i32) {
    %c0_i32 = arith.constant 0 : i32
    %c0_i32_0 = arith.constant 0 : i32
    %c0_i32_1 = arith.constant 0 : i32
    return %c0_i32, %c0_i32_0 : i32, i32
  }
  func.func @transform_5(%arg0: i32) -> (i32, i32) {
    %c0_i32 = arith.constant 0 : i32
    %c0_i32_0 = arith.constant 0 : i32
    %c0_i32_1 = arith.constant 0 : i32
    return %c0_i32, %c0_i32_0 : i32, i32
  }
  func.func @transform_6(%arg0: i32) -> i32 {
    %c0_i32 = arith.constant 0 : i32
    %c0_i32_0 = arith.constant 0 : i32
    return %c0_i32 : i32
  }
  func.func @transform_7(%arg0: i32) -> (i32, i32) {
    %c0_i32 = arith.constant 0 : i32
    %c0_i32_0 = arith.constant 0 : i32
    return %c0_i32, %arg0 : i32, i32
  }
}

</mosaic_0001>

<bundles_post_ra>
// kernel: tpu_custom_call.1
= control target key start
LH: loop header
LB: loop body
LE: loop exit
PB: predicated region body
PF: predicated region fallthrough
CT: control target
= control target key end

     0   :  { %v2096_v3 = vmov 0   ;;  %vm392_vm0 = vcmask 1041408   ;;  %s3022_s0 = inlined_call_operand.vmem [shape: f32[20,256], index: 0, kind: input, shape index: {}]   ;;  %s3023_s1 = inlined_call_operand.vmem [shape: bf16[256,20], index: 1, kind: input, shape index: {}]   ;;  %s3024_s2 = inlined_call_operand.vmem [shape: f32[256,1], index: 2, kind: input, shape index: {}]   ;;  %s3025_s3 = inlined_call_operand.vmem [shape: bf16[256,256], index: 3, kind: input, shape index: {}]   ;;  %s3026_s4 = inlined_call_operand.vmem [shape: f32[256,1], index: 4, kind: input, shape index: {}]   ;;  %s3027_s5 = inlined_call_operand.vmem [shape: bf16[1,256], index: 5, kind: input, shape index: {}]   ;;  %s3028_s6 = inlined_call_operand.<no memory space> [shape: f32[1], index: 6, kind: input, shape index: {}]   ;;  %s3029_s7 = inlined_call_operand.hbm [shape: f32[1,256], index: 7, kind: output, shape index: {}]  }
   0x1   :  { %v101_v0 = vld [vmem:[%s3024_s2 + $0xf0] sm:$0xff]  ;;  %v83_v2 = vld [vmem:[%s3024_s2 + $0x60] sm:$0xff]  ;;  %2069 = vset.pattern.permute.xlu2 %v2096_v3  ;;  %2068 = vset.pattern.permute.xlu1 %v2096_v3  ;;  %v34_v5 = vld [vmem:[%s3022_s0 + $0x28] sm:$0xf] }
   0x2   :  { %v85_v1 = vld [vmem:[%s3024_s2 + $0x70] sm:$0xff]  ;;  %v33_v4 = vld [vmem:[%s3022_s0 + $0x20] sm:$0xf]  ;;  %2067 = vset.pattern.permute.xlu0 %v2096_v3  ;;  %255 = vperm.xlu1 %2068, %v101_v0   ;;  %v38_v7 = vpack.c.bf16 %v34_v5, %v34_v5  ;;  %v30_v10 = vld [vmem:[%s3022_s0 + $0x8] sm:$0xff] }
   0x3   :  { %v37_v6 = vpack.c.bf16 %v33_v4, %v33_v4  ;;  %v29_v8 = vld [vmem:[%s3022_s0] sm:$0xff]  ;;  %v31_v9 = vld [vmem:[%s3022_s0 + $0x10] sm:$0xff]  ;;  %175 = vperm.xlu0 %2067, %v85_v1   ;;  %165 = vperm.xlu2 %2069, %v83_v2   ;;  %v32_v11 = vld [vmem:[%s3022_s0 + $0x18] sm:$0xff] }
   0x4   :  { %v397_v13 = vsel %vm392_vm0, %v38_v7, 0  ;;  %v35_v14 = vpack.c.bf16 %v31_v9, %v29_v8  ;;  %v36_v15 = vpack.c.bf16 %v32_v11, %v30_v10  ;;  %v102_v16 = vld [vmem:[%s3024_s2 + $0xf8] sm:$0xff]  ;;  %v2013_v18 = vld [vmem:[%s3023_s1] sm:$0xff] }
   0x5   :  { %v394_v12 = vsel %vm392_vm0, %v37_v6, 0  ;;  %494 = vmatpush.bf16.msra.mxu1 %v397_v13  ;;  %2063 = vmatpush.bf16.msra.mxu3 %v397_v13  ;;  %v86_v17 = vld [vmem:[%s3024_s2 + $0x78] sm:$0xff] }
   0x6   :  { %405 = vmatpush.bf16.msra.mxu0 %v394_v12  ;;  %2061 = vmatpush.bf16.msra.mxu2 %v394_v12 }
   0x7   :  { %13 = vsyncpa [#allocation4], 0  ;;  %v84_v19 = vld [vmem:[%s3024_s2 + $0x68] sm:$0xff]  ;;  %vm343_vm1 = vcmask 162816   ;;  %v2023_v20 = vld [vmem:[%s3023_s1 + $0x50] sm:$0xff]  ;;  %s2097_s20 = smov [#allocation3]  }
   0x8   :  { %v100_v21 = vld [vmem:[%s3024_s2 + $0xe8] sm:$0xff]  ;;  %v99_v22 = vld [vmem:[%s3024_s2 + $0xe0] sm:$0xff]  ;;  %v81_v23 = vld [vmem:[%s3024_s2 + $0x50] sm:$0xff]  ;;  %s1778_s21 = sshll.u32 %s2097_s20, 4  ;;  %s1780_s24 = sshll.u32 %s3029_s7, 4  ;;  %vm1765_vm2 = vcmask 1040384   ;;  %s1779_s21 = int_to_ptr.vmem [resolvable:$true] %s1778_s21  ;;  %s1781_s24 = int_to_ptr.hbm [resolvable:$true] %s1780_s24 }
   0x9   :  { %495 = vmatpush.bf16.msra.mxu1 %v36_v15  ;;  %2064 = vmatpush.bf16.msra.mxu3 %v36_v15  ;;  %v97_v24 = vld [vmem:[%s3024_s2 + $0xd0] sm:$0xff]  ;;  %v82_v25 = vld [vmem:[%s3024_s2 + $0x58] sm:$0xff]  ;;  %v2014_v26 = vld [vmem:[%s3023_s1 + $0x8] sm:$0xff] }
   0xa   :  { %406 = vmatpush.bf16.msra.mxu0 %v35_v14  ;;  %2062 = vmatpush.bf16.msra.mxu2 %v35_v14  ;;  %v98_v27 = vld [vmem:[%s3024_s2 + $0xd8] sm:$0xff]  ;;  %v80_v29 = vld [vmem:[%s3024_s2 + $0x48] sm:$0xff]  ;;  %v79_v30 = vld [vmem:[%s3024_s2 + $0x40] sm:$0xff] }
   0xb   :  { %260 = vperm.xlu1 %2068, %v102_v16   ;;  %180 = vperm.xlu0 %2067, %v86_v17   ;;  %v2024_v28 = vld [vmem:[%s3023_s1 + $0x58] sm:$0xff]  ;;  %v95_v31 = vld [vmem:[%s3024_s2 + $0xc0] sm:$0xff]  ;;  %v96_v32 = vld [vmem:[%s3024_s2 + $0xc8] sm:$0xff] }
   0xc   :  { %170 = vperm.xlu2 %2069, %v84_v19   ;;  %1869 = vmatmul.msk.bf16.vlgmr.msra.gmra.mxu1 %vm343_vm1, %v2013_v18  ;;  %v77_v33 = vld [vmem:[%s3024_s2 + $0x30] sm:$0xff]  ;;  %v78_v35 = vld [vmem:[%s3024_s2 + $0x38] sm:$0xff]  ;;  %v2025_v36 = vld [vmem:[%s3023_s1 + $0x60] sm:$0xff] }
   0xd   :  { %1853 = vmatmul.msk.bf16.vlgmr.msra.gmra.mxu0 %vm343_vm1, %v2013_v18  ;;  %1863 = vmatmul.msk.bf16.vlgmr.msra.gmra.mxu2 %vm343_vm1, %v2023_v20  ;;  %v2015_v34 = vld [vmem:[%s3023_s1 + $0x10] sm:$0xff]  ;;  %v94_v38 = vld [vmem:[%s3024_s2 + $0xb8] sm:$0xff]  ;;  %v75_v39 = vld [vmem:[%s3024_s2 + $0x20] sm:$0xff] }
   0xe   :  { %1879 = vmatmul.msk.bf16.vlgmr.msra.gmra.mxu3 %vm343_vm1, %v2023_v20  ;;  %v93_v37 = vld [vmem:[%s3024_s2 + $0xb0] sm:$0xff]  ;;  %v91_v40 = vld [vmem:[%s3024_s2 + $0xa0] sm:$0xff]  ;;  %v76_v41 = vld [vmem:[%s3024_s2 + $0x28] sm:$0xff] }
   0xf   :  { %v2016_v42 = vld [vmem:[%s3023_s1 + $0x18] sm:$0xff]  ;;  %v92_v43 = vld [vmem:[%s3024_s2 + $0xa8] sm:$0xff]  ;;  %v73_v46 = vld [vmem:[%s3024_s2 + $0x10] sm:$0xff] }
  0x10   :  { %v2026_v44 = vld [vmem:[%s3023_s1 + $0x68] sm:$0xff]  ;;  %v74_v45 = vld [vmem:[%s3024_s2 + $0x18] sm:$0xff]  ;;  %v89_v47 = vld [vmem:[%s3024_s2 + $0x90] sm:$0xff] }
  0x11   :  { %v90_v48 = vld [vmem:[%s3024_s2 + $0x98] sm:$0xff]  ;;  %v71_v49 = vld [vmem:[%s3024_s2] sm:$0xff]  ;;  %v72_v51 = vld [vmem:[%s3024_s2 + $0x8] sm:$0xff] }
  0x12   :  { %v2017_v50 = vld [vmem:[%s3023_s1 + $0x20] sm:$0xff]  ;;  %v2027_v52 = vld [vmem:[%s3023_s1 + $0x70] sm:$0xff]  ;;  %v88_v54 = vld [vmem:[%s3024_s2 + $0x88] sm:$0xff] }
  0x13   :  { %250 = vperm.xlu1 %2068, %v100_v21   ;;  %245 = vperm.xlu0 %2067, %v99_v22   ;;  %v87_v53 = vld [vmem:[%s3024_s2 + $0x80] sm:$0xff]  ;;  %v815_v55 = vld [vmem:[%s3026_s4 + $0x70] sm:$0xff]  ;;  %v816_v56 = vld [vmem:[%s3026_s4 + $0x78] sm:$0xff] }
  0x14   :  { %155 = vperm.xlu2 %2069, %v81_v23   ;;  %v831_v57 = vld [vmem:[%s3026_s4 + $0xf0] sm:$0xff]  ;;  %v2018_v58 = vld [vmem:[%s3023_s1 + $0x28] sm:$0xff]  ;;  %v832_v59 = vld [vmem:[%s3026_s4 + $0xf8] sm:$0xff] }
  0x15   :  { %v2028_v60 = vld [vmem:[%s3023_s1 + $0x78] sm:$0xff]  ;;  %v813_v61 = vld [vmem:[%s3026_s4 + $0x60] sm:$0xff]  ;;  %v814_v62 = vld [vmem:[%s3026_s4 + $0x68] sm:$0xff] }
  0x16   :  { %v829_v63 = vld [vmem:[%s3026_s4 + $0xe0] sm:$0xff]  ;;  %v830_v0 = vld [vmem:[%s3026_s4 + $0xe8] sm:$0xff]  ;;  %v811_v1 = vld [vmem:[%s3026_s4 + $0x50] sm:$0xff] }
  0x17   :  { %v2019_v2 = vld [vmem:[%s3023_s1 + $0x30] sm:$0xff]  ;;  %v812_v3 = vld [vmem:[%s3026_s4 + $0x58] sm:$0xff]  ;;  %v809_v6 = vld [vmem:[%s3026_s4 + $0x40] sm:$0xff] }
  0x18   :  { %v827_v4 = vld [vmem:[%s3026_s4 + $0xd0] sm:$0xff]  ;;  %v828_v5 = vld [vmem:[%s3026_s4 + $0xd8] sm:$0xff]  ;;  %v810_v7 = vld [vmem:[%s3026_s4 + $0x48] sm:$0xff] }
  0x19   :  { %v825_v8 = vld [vmem:[%s3026_s4 + $0xc0] sm:$0xff]  ;;  %v2020_v9 = vld [vmem:[%s3023_s1 + $0x38] sm:$0xff]  ;;  %v826_v10 = vld [vmem:[%s3026_s4 + $0xc8] sm:$0xff] }
  0x1a   :  { %v807_v11 = vld [vmem:[%s3026_s4 + $0x30] sm:$0xff]  ;;  %v808_v12 = vld [vmem:[%s3026_s4 + $0x38] sm:$0xff]  ;;  %v805_v15 = vld [vmem:[%s3026_s4 + $0x20] sm:$0xff] }
  0x1b   :  { %235 = vperm.xlu1 %2068, %v97_v24   ;;  %160 = vperm.xlu0 %2067, %v82_v25   ;;  %v823_v13 = vld [vmem:[%s3026_s4 + $0xb0] sm:$0xff]  ;;  %v824_v14 = vld [vmem:[%s3026_s4 + $0xb8] sm:$0xff]  ;;  %v2021_v16 = vld [vmem:[%s3023_s1 + $0x40] sm:$0xff] }
  0x1c   :  { %240 = vperm.xlu2 %2069, %v98_v27   ;;  %1870 = vmatmul.msk.bf16.gmra.mxu1 %vm343_vm1, %v2014_v26  ;;  %v806_v18 = vld [vmem:[%s3026_s4 + $0x28] sm:$0xff]  ;;  %v821_v21 = vld [vmem:[%s3026_s4 + $0xa0] sm:$0xff]  ;;  %v803_v25 = vld [vmem:[%s3026_s4 + $0x10] sm:$0xff] }
  0x1d   :  { %1854 = vmatmul.msk.bf16.gmra.mxu0 %vm343_vm1, %v2014_v26  ;;  %1864 = vmatmul.msk.bf16.gmra.mxu2 %vm343_vm1, %v2024_v28  ;;  %v822_v22 = vld [vmem:[%s3026_s4 + $0xa8] sm:$0xff] }
  0x1e   :  { %1880 = vmatmul.msk.bf16.gmra.mxu3 %vm343_vm1, %v2024_v28  ;;  %v804_v28 = vld [vmem:[%s3026_s4 + $0x18] sm:$0xff] }
  0x23   :  { %150 = vperm.xlu1 %2068, %v80_v29   ;;  %145 = vperm.xlu0 %2067, %v79_v30   ;;  %v819_v29 = vld [vmem:[%s3026_s4 + $0x90] sm:$0xff]  ;;  %v2022_v30 = vld [vmem:[%s3023_s1 + $0x48] sm:$0xff] }
  0x24   :  { %225 = vperm.xlu2 %2069, %v95_v31  }
  0x2b   :  { %230 = vperm.xlu0 %2067, %v96_v32   ;;  %135 = vperm.xlu1 %2068, %v77_v33   ;;  %v820_v33 = vld [vmem:[%s3026_s4 + $0x98] sm:$0xff] }
  0x2c   :  { %140 = vperm.xlu2 %2069, %v78_v35   ;;  %1871 = vmatmul.msk.bf16.gmra.mxu1 %vm343_vm1, %v2015_v34 }
  0x2d   :  { %1855 = vmatmul.msk.bf16.gmra.mxu0 %vm343_vm1, %v2015_v34  ;;  %1865 = vmatmul.msk.bf16.gmra.mxu2 %vm343_vm1, %v2025_v36 }
  0x2e   :  { %1881 = vmatmul.msk.bf16.gmra.mxu3 %vm343_vm1, %v2025_v36  ;;  %v801_v36 = vld [vmem:[%s3026_s4] sm:$0xff] }
  0x33   :  { %215 = vperm.xlu0 %2067, %v93_v37   ;;  %220 = vperm.xlu1 %2068, %v94_v38   ;;  %v802_v37 = vld [vmem:[%s3026_s4 + $0x8] sm:$0xff] }
  0x34   :  { %125 = vperm.xlu2 %2069, %v75_v39  }
  0x3b   :  { %205 = vperm.xlu1 %2068, %v91_v40   ;;  %130 = vperm.xlu0 %2067, %v76_v41   ;;  %v817_v40 = vld [vmem:[%s3026_s4 + $0x80] sm:$0xff] }
  0x3c   :  { %210 = vperm.xlu2 %2069, %v92_v43   ;;  %1872 = vmatmul.msk.bf16.gmra.mxu1 %vm343_vm1, %v2016_v42  ;;  %v818_v43 = vld [vmem:[%s3026_s4 + $0x88] sm:$0xff] }
  0x3d   :  { %1856 = vmatmul.msk.bf16.gmra.mxu0 %vm343_vm1, %v2016_v42  ;;  %1866 = vmatmul.msk.bf16.gmra.mxu2 %vm343_vm1, %v2026_v44 }
  0x3e   :  { %1882 = vmatmul.msk.bf16.gmra.mxu3 %vm343_vm1, %v2026_v44 }
  0x43   :  { %120 = vperm.xlu1 %2068, %v74_v45   ;;  %115 = vperm.xlu0 %2067, %v73_v46  }
  0x44   :  { %195 = vperm.xlu2 %2069, %v89_v47  }
  0x4b   :  { %200 = vperm.xlu0 %2067, %v90_v48   ;;  %105 = vperm.xlu1 %2068, %v71_v49  }
  0x4c   :  { %110 = vperm.xlu2 %2069, %v72_v51   ;;  %1873 = vmatmul.msk.bf16.gmra.mxu1 %vm343_vm1, %v2017_v50 }
  0x4d   :  { %1857 = vmatmul.msk.bf16.gmra.mxu0 %vm343_vm1, %v2017_v50  ;;  %1867 = vmatmul.msk.bf16.gmra.mxu2 %vm343_vm1, %v2027_v52 }
  0x4e   :  { %1883 = vmatmul.msk.bf16.gmra.mxu3 %vm343_vm1, %v2027_v52 }
  0x53   :  { %185 = vperm.xlu0 %2067, %v87_v53   ;;  %190 = vperm.xlu1 %2068, %v88_v54  }
  0x54   :  { %905 = vperm.xlu2 %2069, %v815_v55  }
  0x5b   :  { %910 = vperm.xlu0 %2067, %v816_v56   ;;  %985 = vperm.xlu1 %2068, %v831_v57  }
  0x5c   :  { %990 = vperm.xlu2 %2069, %v832_v59   ;;  %1874 = vmatmul.msk.bf16.gmra.mxu1 %vm343_vm1, %v2018_v58 }
  0x5d   :  { %1858 = vmatmul.msk.bf16.gmra.mxu0 %vm343_vm1, %v2018_v58  ;;  %1868 = vmatmul.msk.bf16.gmra.mxu2 %vm343_vm1, %v2028_v60  ;;  %v2464_v47 = vpop.permute.xlu2 %165 }
  0x5e   :  { %1884 = vmatmul.msk.bf16.gmra.mxu3 %vm343_vm1, %v2028_v60 }
  0x63   :  { %895 = vperm.xlu0 %2067, %v813_v61   ;;  %900 = vperm.xlu1 %2068, %v814_v62  }
  0x64   :  { %975 = vperm.xlu2 %2069, %v829_v63  }
  0x66   :  { %v2482_v57 = vpop.permute.xlu2 %170 }
  0x6b   :  { %980 = vperm.xlu0 %2067, %v830_v0   ;;  %885 = vperm.xlu1 %2068, %v811_v1  }
  0x6c   :  { %890 = vperm.xlu2 %2069, %v812_v3   ;;  %1875 = vmatmul.msk.bf16.gmra.mxu1 %vm343_vm1, %v2019_v2 }
  0x6d   :  { %1859 = vmatmul.msk.bf16.gmra.mxu0 %vm343_vm1, %v2019_v2 }
  0x6e   :  { %v2492_v1 = vpop.permute.xlu2 %155 }
  0x73   :  { %965 = vperm.xlu0 %2067, %v827_v4   ;;  %970 = vperm.xlu1 %2068, %v828_v5  }
  0x74   :  { %875 = vperm.xlu2 %2069, %v809_v6   ;;  %v256_v51 = vpop.permute.xlu1 %255 }
  0x75   :  { %v2474_v53 = vpop.permute.xlu0 %175 }
  0x7b   :  { %880 = vperm.xlu0 %2067, %v810_v7   ;;  %955 = vperm.xlu1 %2068, %v825_v8   ;;  %v241_v8 = vpop.permute.xlu2 %240 }
  0x7c   :  { %960 = vperm.xlu2 %2069, %v826_v10   ;;  %1876 = vmatmul.msk.bf16.gmra.mxu1 %vm343_vm1, %v2020_v9 }
  0x7d   :  { %1860 = vmatmul.msk.bf16.gmra.mxu0 %vm343_vm1, %v2020_v9  ;;  %v261_v59 = vpop.permute.xlu1 %260  ;;  %v2486_v60 = vpop.permute.xlu0 %180 }
  0x83   :  { %865 = vperm.xlu0 %2067, %v807_v11   ;;  %870 = vperm.xlu1 %2068, %v808_v12  }
  0x84   :  { %945 = vperm.xlu2 %2069, %v823_v13  }
  0x85   :  { %v251_v2 = vpop.permute.xlu1 %250  ;;  %v246_v6 = vpop.permute.xlu0 %245 }
  0x89   :  { %v2393_v19 = vpop.f32.mrf.mxu1 }
  0x8a   :  { %v2388_v17 = vpop.f32.mrf.mxu0  ;;  %3041 = vst [vmem:[#allocation7_spill] sm:$0xff] %v2393_v19 }
  0x8b   :  { %3040 = vst [vmem:[#allocation6_spill] sm:$0xff] %v2388_v17  ;;  %950 = vperm.xlu0 %2067, %v824_v14   ;;  %855 = vperm.xlu1 %2068, %v805_v15   ;;  %v226_v15 = vpop.permute.xlu2 %225 }
  0x8c   :  { %860 = vperm.xlu2 %2069, %v806_v18   ;;  %1877 = vmatmul.msk.bf16.gmra.mxu1 %vm343_vm1, %v2021_v16 }
  0x8d   :  { %1861 = vmatmul.msk.bf16.gmra.mxu0 %vm343_vm1, %v2021_v16  ;;  %v236_v9 = vpop.permute.xlu1 %235  ;;  %v2502_v14 = vpop.permute.xlu0 %160 }
  0x90   :  { %v2397_v20 = vpop.f32.mrf.mxu2 }
  0x91   :  { %v2405_v23 = vpop.f32.mrf.mxu3  ;;  %v2412_v26 = vpop.f32.mrf.mxu1 }
  0x92   :  { %v2407_v24 = vpop.f32.mrf.mxu0  ;;  %3043 = vst [vmem:[#allocation9_spill] sm:$0xff] %v2412_v26 }
  0x93   :  { %3042 = vst [vmem:[#allocation8_spill] sm:$0xff] %v2407_v24  ;;  %935 = vperm.xlu0 %2067, %v821_v21   ;;  %940 = vperm.xlu1 %2068, %v822_v22  }
  0x94   :  { %845 = vperm.xlu2 %2069, %v803_v25  }
  0x95   :  { %v2506_v22 = vpop.permute.xlu1 %150 }
  0x98   :  { %v2414_v27 = vpop.f32.mrf.mxu2 }
  0x99   :  { %v2425_v31 = vpop.f32.mrf.mxu3  ;;  %v2432_v34 = vpop.f32.mrf.mxu1 }
  0x9a   :  { %v2427_v32 = vpop.f32.mrf.mxu0  ;;  %3045 = vst [vmem:[#allocation11_spill] sm:$0xff] %v2432_v34 }
  0x9b   :  { %3044 = vst [vmem:[#allocation10_spill] sm:$0xff] %v2427_v32  ;;  %850 = vperm.xlu0 %2067, %v804_v28   ;;  %925 = vperm.xlu1 %2068, %v819_v29   ;;  %v2510_v28 = vpop.permute.xlu0 %145 }
  0x9c   :  { %930 = vperm.xlu2 %2069, %v820_v33   ;;  %1878 = vmatmul.msk.bf16.gmra.mxu1 %vm343_vm1, %v2022_v30 }
  0x9d   :  { %1862 = vmatmul.msk.bf16.gmra.mxu0 %vm343_vm1, %v2022_v30 }
  0xa0   :  { %v2436_v35 = vpop.f32.mrf.mxu2 }
  0xa1   :  { %v2444_v38 = vpop.f32.mrf.mxu3  ;;  %v2451_v41 = vpop.f32.mrf.mxu1 }
  0xa2   :  { %v2446_v39 = vpop.f32.mrf.mxu0  ;;  %3047 = vst [vmem:[#allocation13_spill] sm:$0xff] %v2451_v41 }
  0xa3   :  { %3046 = vst [vmem:[#allocation12_spill] sm:$0xff] %v2446_v39  ;;  %835 = vperm.xlu0 %2067, %v801_v36   ;;  %840 = vperm.xlu1 %2068, %v802_v37   ;;  %v2516_v37 = vpop.permute.xlu2 %140  ;;  %v231_v26 = vpop.permute.xlu0 %230 }
  0xa4   :  { %915 = vperm.xlu2 %2069, %v817_v40   ;;  %3058 = vst [vmem:[#allocation24_spill] sm:$0xff] %v2516_v37  ;;  %v2518_v40 = vpop.permute.xlu1 %135 }
  0xa5   :  { %3059 = vst [vmem:[#allocation25_spill] sm:$0xff] %v2518_v40 }
  0xa8   :  { %v2453_v42 = vpop.f32.mrf.mxu2 }
  0xa9   :  { %v2458_v44 = vpop.f32.mrf.mxu3  ;;  %v2462_v46 = vpop.f32.mrf.mxu1 }
  0xaa   :  { %v2460_v45 = vpop.f32.mrf.mxu0  ;;  %3049 = vst [vmem:[#allocation15_spill] sm:$0xff] %v2462_v46 }
  0xab   :  { %3048 = vst [vmem:[#allocation14_spill] sm:$0xff] %v2460_v45  ;;  %920 = vperm.xlu0 %2067, %v818_v43  }
  0xb0   :  { %v2466_v48 = vpop.f32.mrf.mxu2 }
  0xb1   :  { %v2468_v49 = vpop.f32.mrf.mxu3  ;;  %v2472_v52 = vpop.f32.mrf.mxu1 }
  0xb2   :  { %v2470_v50 = vpop.f32.mrf.mxu0  ;;  %3051 = vst [vmem:[#allocation17_spill] sm:$0xff] %v2472_v52 }
  0xb3   :  { %3050 = vst [vmem:[#allocation16_spill] sm:$0xff] %v2470_v50 }
  0xb8   :  { %v2476_v54 = vpop.f32.mrf.mxu2 }
  0xb9   :  { %v2478_v55 = vpop.f32.mrf.mxu3  ;;  %v2484_v58 = vpop.f32.mrf.mxu1 }
  0xba   :  { %v2480_v56 = vpop.f32.mrf.mxu0  ;;  %3053 = vst [vmem:[#allocation19_spill] sm:$0xff] %v2484_v58  ;;  %v2524_v58 = vpop.permute.xlu2 %125 }
  0xbb   :  { %3052 = vst [vmem:[#allocation18_spill] sm:$0xff] %v2480_v56 }
  0xc0   :  { %v473_v61 = vpop.f32.mrf.mxu2 }
  0xc1   :  { %v562_v62 = vpop.f32.mrf.mxu3  ;;  %v2490_v0 = vpop.f32.mrf.mxu1 }
  0xc2   :  { %v2488_v63 = vpop.f32.mrf.mxu0  ;;  %3055 = vst [vmem:[#allocation21_spill] sm:$0xff] %v2490_v0  ;;  %v563_v40 = vadd.f32 %v562_v62, %v236_v9 }
  0xc3   :  { %3054 = vst [vmem:[#allocation20_spill] sm:$0xff] %v2488_v63 }
  0xc8   :  { %v475_v3 = vpop.f32.mrf.mxu2 }
  0xc9   :  { %v564_v4 = vpop.f32.mrf.mxu3  ;;  %v2496_v7 = vpop.f32.mrf.mxu1 }
  0xca   :  { %v2494_v5 = vpop.f32.mrf.mxu0 }
  0xcb   :  { %3056 = vst [vmem:[#allocation22_spill] sm:$0xff] %v2494_v5  ;;  %v565_v5 = vadd.f32 %v564_v4, %v241_v8 }
  0xcd   :  { %v728_v62 = vmax.f32 %v565_v5, 0.0  ;;  %v211_v5 = vpop.permute.xlu2 %210 }
  0xd0   :  { %v478_v10 = vpop.f32.mrf.mxu2 }
  0xd1   :  { %v567_v11 = vpop.f32.mrf.mxu3  ;;  %v2500_v13 = vpop.f32.mrf.mxu1  ;;  %v479_v50 = vadd.f32 %v478_v10, %v246_v6 }
  0xd2   :  { %v2498_v12 = vpop.f32.mrf.mxu0  ;;  %3057 = vst [vmem:[#allocation23_spill] sm:$0xff] %v2500_v13  ;;  %v568_v0 = vadd.f32 %v567_v11, %v246_v6  ;;  %v461_v11 = vadd.f32 %v2414_v27, %v211_v5 }
  0xd4   :  { %v730_v6 = vmax.f32 %v568_v0, 0.0 }
  0xd8   :  { %v480_v16 = vpop.f32.mrf.mxu2 }
  0xd9   :  { %v569_v18 = vpop.f32.mrf.mxu3  ;;  %v2508_v25 = vpop.f32.mrf.mxu1  ;;  %v481_v17 = vadd.f32 %v480_v16, %v251_v2 }
  0xda   :  { %v2504_v21 = vpop.f32.mrf.mxu0  ;;  %v570_v39 = vadd.f32 %v569_v18, %v251_v2 }
  0xdc   :  { %v732_v13 = vmax.f32 %v570_v39, 0.0 }
  0xe0   :  { %v483_v29 = vpop.f32.mrf.mxu2 }
  0xe1   :  { %v572_v30 = vpop.f32.mrf.mxu3  ;;  %v2514_v36 = vpop.f32.mrf.mxu1  ;;  %v484_v43 = vadd.f32 %v483_v29, %v256_v51  ;;  %v474_v29 = vadd.f32 %v473_v61, %v236_v9 }
  0xe2   :  { %v2512_v33 = vpop.f32.mrf.mxu0  ;;  %v573_v24 = vadd.f32 %v572_v30, %v256_v51  ;;  %v476_v51 = vadd.f32 %v475_v3, %v241_v8  ;;  %v731_v30 = vmax.f32 %v481_v17, 0.0 }
  0xe3   :  { %v733_v46 = vmax.f32 %v484_v43, 0.0 }
  0xe4   :  { %v734_v63 = vmax.f32 %v573_v24, 0.0  ;;  %v471_v24 = vadd.f32 %v2476_v54, %v231_v26  ;;  %v727_v61 = vmax.f32 %v476_v51, 0.0 }
  0xe6   :  { %v723_v4 = vmax.f32 %v471_v24, 0.0 }
  0xe8   :  { %v485_v19 = vpop.f32.mrf.mxu2 }
  0xe9   :  { %v486_v34 = vadd.f32 %v485_v19, %v261_v59  ;;  %v574_v41 = vpop.f32.mrf.mxu3  ;;  %v2522_v52 = vpop.f32.mrf.mxu1 }
  0xea   :  { %v2520_v32 = vpop.f32.mrf.mxu0  ;;  %v575_v45 = vadd.f32 %v574_v41, %v261_v59  ;;  %v221_v19 = vpop.permute.xlu1 %220  ;;  %v729_v41 = vmax.f32 %v479_v50, 0.0  ;;  %v469_v59 = vadd.f32 %v2466_v48, %v226_v15 }
  0xeb   :  { %v735_v56 = vmax.f32 %v486_v34, 0.0  ;;  %v558_v34 = vadd.f32 %v2468_v49, %v226_v15  ;;  %v216_v50 = vpop.permute.xlu0 %215  ;;  %v466_v0 = vadd.f32 %v2453_v42, %v221_v19  ;;  %v555_v9 = vadd.f32 %v2458_v44, %v221_v19 }
  0xec   :  { %v736_v37 = vmax.f32 %v575_v45, 0.0  ;;  %v725_v45 = vmax.f32 %v474_v29, 0.0  ;;  %v765_v17 = vpack.c.bf16 %v731_v30, %v729_v41  ;;  %v464_v48 = vadd.f32 %v2436_v35, %v216_v50 }
  0xed   :  { %v767_v16 = vpack.c.bf16 %v735_v56, %v733_v46  ;;  %v560_v46 = vadd.f32 %v2478_v55, %v231_v26  ;;  %v726_v56 = vmax.f32 %v563_v40, 0.0  ;;  %v553_v49 = vadd.f32 %v2444_v38, %v216_v50 }
  0xee   :  { %v768_v2 = vpack.c.bf16 %v736_v37, %v734_v63  ;;  %v766_v63 = vpack.c.bf16 %v732_v13, %v730_v6  ;;  %v721_v54 = vmax.f32 %v469_v59, 0.0  ;;  %v763_v8 = vpack.c.bf16 %v727_v61, %v725_v45 }
  0xef   :  { %1242 = vmatpush.bf16.msrb.mxu3 %v767_v16  ;;  %v722_v10 = vmax.f32 %v558_v34, 0.0  ;;  %v724_v26 = vmax.f32 %v560_v46, 0.0  ;;  %v764_v55 = vpack.c.bf16 %v728_v62, %v726_v56  ;;  %v550_v13 = vadd.f32 %v2425_v31, %v211_v5 }
  0xf0   :  { %1420 = vmatpush.bf16.msrb.mxu1 %v768_v2  ;;  %v717_v38 = vmax.f32 %v464_v48, 0.0  ;;  %v719_v15 = vmax.f32 %v466_v0, 0.0  ;;  %v761_v37 = vpack.c.bf16 %v723_v4, %v721_v54  ;;  %v718_v40 = vmax.f32 %v553_v49, 0.0 }
  0xf1   :  { %v529_v39 = vpop.f32.mrf.mxu1  ;;  %v720_v43 = vmax.f32 %v555_v9, 0.0  ;;  %v762_v51 = vpack.c.bf16 %v724_v26, %v722_v10  ;;  %v715_v30 = vmax.f32 %v461_v11, 0.0  ;;  %v716_v31 = vmax.f32 %v550_v13, 0.0 }
  0xf2   :  { %v440_v3 = vpop.f32.mrf.mxu0  ;;  %v206_v35 = vpop.permute.xlu1 %205  ;;  %v759_v16 = vpack.c.bf16 %v719_v15, %v717_v38  ;;  %v530_v61 = vadd.f32 %v529_v39, %v2482_v57  ;;  %v439_v46 = vadd.f32 %v2520_v32, %v2464_v47  ;;  %v436_v48 = vadd.f32 %v2512_v33, %v2502_v14  ;;  %v3063_v38 = vld [vmem:[#allocation19_spill] sm:$0xff] }
  0xf3   :  { %1243 = vmatpush.bf16.msrb.mxu3 %v765_v17  ;;  %v459_v42 = vadd.f32 %v2397_v20, %v206_v35  ;;  %v548_v44 = vadd.f32 %v2405_v23, %v206_v35  ;;  %v760_v2 = vpack.c.bf16 %v720_v43, %v718_v40  ;;  %v441_v23 = vadd.f32 %v440_v3, %v2482_v57  ;;  %v3062_v35 = vld [vmem:[#allocation25_spill] sm:$0xff] }
  0xf4   :  { %1421 = vmatpush.bf16.msrb.mxu1 %v766_v63  ;;  %v528_v63 = vadd.f32 %v2522_v52, %v2464_v47  ;;  %v700_v39 = vmax.f32 %v530_v61, 0.0  ;;  %v434_v32 = vadd.f32 %v2504_v21, %v2492_v1  ;;  %v697_v54 = vmax.f32 %v439_v46, 0.0  ;;  %v3060_v21 = vld [vmem:[#allocation23_spill] sm:$0xff]  ;;  %v3066_v43 = vld [vmem:[#allocation21_spill] sm:$0xff]  ;;  %v3071_v46 = vld [vmem:[#allocation14_spill] sm:$0xff] }
  0xf5   :  { %v713_v27 = vmax.f32 %v459_v42, 0.0  ;;  %v714_v19 = vmax.f32 %v548_v44, 0.0  ;;  %v699_v49 = vmax.f32 %v441_v23, 0.0  ;;  %v523_v47 = vadd.f32 %v2508_v25, %v2492_v1  ;;  %v3061_v1 = vld [vmem:[#allocation22_spill] sm:$0xff]  ;;  %v3064_v42 = vld [vmem:[#allocation24_spill] sm:$0xff] }
  0xf6   :  { %v698_v52 = vmax.f32 %v528_v63, 0.0  ;;  %v431_v33 = vadd.f32 %v2498_v12, %v2506_v22  ;;  %v520_v10 = vadd.f32 %v3060_v21, %v2506_v22  ;;  %v429_v25 = vadd.f32 %v3061_v1, %v2510_v28  ;;  %v2568_v12 = vpop.permute.xlu2 %195 }
  0xf7   :  { %1244 = vmatpush.bf16.msrb.mxu3 %v763_v8  ;;  %v757_v34 = vpack.c.bf16 %v715_v30, %v713_v27  ;;  %v758_v45 = vpack.c.bf16 %v716_v31, %v714_v19  ;;  %v695_v8 = vmax.f32 %v436_v48, 0.0  ;;  %v693_v5 = vmax.f32 %v434_v32, 0.0  ;;  %v3067_v30 = vld [vmem:[#allocation18_spill] sm:$0xff]  ;;  %v3068_v31 = vld [vmem:[#allocation15_spill] sm:$0xff] }
  0xf8   :  { %1422 = vmatpush.bf16.msrb.mxu1 %v764_v55  ;;  %v750_v55 = vpack.c.bf16 %v700_v39, %v698_v52  ;;  %v694_v13 = vmax.f32 %v523_v47, 0.0  ;;  %v513_v15 = vadd.f32 %v3063_v38, %v3062_v35  ;;  %v515_v44 = vadd.f32 %v3066_v43, %v3064_v42  ;;  %v3078_v38 = vld [vmem:[#allocation8_spill] sm:$0xff] }
  0xf9   :  { %v532_v29 = vpop.f32.mrf.mxu1  ;;  %v747_v22 = vpack.c.bf16 %v695_v8, %v693_v5  ;;  %v424_v27 = vadd.f32 %v3067_v30, %v3062_v35  ;;  %v508_v19 = vadd.f32 %v3068_v31, %v2524_v58 }
  0xfa   :  { %v443_v18 = vpop.f32.mrf.mxu0  ;;  %v533_v20 = vadd.f32 %v532_v29, %v2474_v53  ;;  %v121_v11 = vpop.permute.xlu1 %120  ;;  %v692_v29 = vmax.f32 %v520_v10, 0.0  ;;  %v688_v61 = vmax.f32 %v515_v44, 0.0  ;;  %v3076_v10 = vld [vmem:[#allocation6_spill] sm:$0xff] }
  0xfb   :  { %1245 = vmatpush.bf16.msrb.mxu3 %v761_v37  ;;  %v444_v41 = vadd.f32 %v443_v18, %v2474_v53  ;;  %v131_v53 = vpop.permute.xlu0 %130  ;;  %v691_v37 = vmax.f32 %v431_v33, 0.0  ;;  %v682_v63 = vmax.f32 %v508_v19, 0.0 }
  0xfc   :  { %1423 = vmatpush.bf16.msrb.mxu1 %v762_v51  ;;  %v702_v3 = vmax.f32 %v533_v20, 0.0 }
  0xfd   :  { %v701_v56 = vmax.f32 %v444_v41, 0.0  ;;  %v3069_v41 = vld [vmem:[#allocation16_spill] sm:$0xff] }
  0xfe   :  { %v421_v20 = vadd.f32 %v3069_v41, %v131_v53  ;;  %v111_v33 = vpop.permute.xlu2 %110 }
  0xff   :  { %1246 = vmatpush.bf16.msrb.mxu3 %v759_v16  ;;  %v689_v16 = vmax.f32 %v429_v25, 0.0 }
 0x100   :  { %1424 = vmatpush.bf16.msrb.mxu1 %v760_v2 }
 0x101   :  { %v534_v24 = vpop.f32.mrf.mxu1  ;;  %v745_v23 = vpack.c.bf16 %v691_v37, %v689_v16 }
 0x102   :  { %v445_v59 = vpop.f32.mrf.mxu0  ;;  %v535_v17 = vadd.f32 %v534_v24, %v2486_v60  ;;  %v106_v47 = vpop.permute.xlu1 %105 }
 0x103   :  { %v446_v6 = vadd.f32 %v445_v59, %v2486_v60  ;;  %1247 = vmatpush.bf16.msrb.mxu3 %v757_v34  ;;  %v525_v60 = vadd.f32 %v2514_v36, %v2502_v14  ;;  %v749_v14 = vpack.c.bf16 %v699_v49, %v697_v54  ;;  %v518_v36 = vadd.f32 %v2496_v7, %v2510_v28  ;;  %v3065_v7 = vld [vmem:[#allocation20_spill] sm:$0xff]  ;;  %v116_v40 = vpop.permute.xlu0 %115  ;;  %v3073_v49 = vld [vmem:[#allocation10_spill] sm:$0xff] }
 0x104   :  { %1425 = vmatpush.bf16.msrb.mxu1 %v758_v45  ;;  %v704_v50 = vmax.f32 %v535_v17, 0.0  ;;  %v426_v18 = vadd.f32 %v3065_v7, %v3064_v42  ;;  %v686_v45 = vmax.f32 %v513_v15, 0.0  ;;  %v411_v15 = vadd.f32 %v3078_v38, %v111_v33  ;;  %v3079_v42 = vld [vmem:[#allocation9_spill] sm:$0xff] }
 0x105   :  { %v703_v62 = vmax.f32 %v446_v6, 0.0  ;;  %v696_v26 = vmax.f32 %v525_v60, 0.0  ;;  %v690_v28 = vmax.f32 %v518_v36, 0.0  ;;  %v3070_v6 = vld [vmem:[#allocation17_spill] sm:$0xff]  ;;  %v500_v7 = vadd.f32 %v3079_v42, %v111_v33 }
 0x106   :  { %v752_v0 = vpack.c.bf16 %v704_v50, %v702_v3  ;;  %v687_v59 = vmax.f32 %v426_v18, 0.0  ;;  %v510_v24 = vadd.f32 %v3070_v6, %v131_v53  ;;  %v683_v3 = vmax.f32 %v421_v20, 0.0  ;;  %v3072_v50 = vld [vmem:[#allocation12_spill] sm:$0xff]  ;;  %v3075_v53 = vld [vmem:[#allocation11_spill] sm:$0xff]  ;;  %v2034_v33 = vld [vmem:[%s3025_s3 + $0x24] sm:$0xf0] }
 0x107   :  { %v751_v57 = vpack.c.bf16 %v703_v62, %v701_v56  ;;  %v748_v51 = vpack.c.bf16 %v696_v26, %v694_v13  ;;  %v746_v17 = vpack.c.bf16 %v692_v29, %v690_v28  ;;  %v419_v56 = vadd.f32 %v3071_v46, %v2524_v58  ;;  %v3077_v13 = vld [vmem:[#allocation7_spill] sm:$0xff]  ;;  %v1887_v28 = vld [vmem:[%s3025_s3] sm:$0xf]  ;;  %v2030_v29 = vld [vmem:[%s3025_s3 + $0x4] sm:$0xf0] }
 0x108   :  { %1331 = vmatpush.bf16.msrb.mxu0 %v752_v0  ;;  %v685_v62 = vmax.f32 %v424_v27, 0.0  ;;  %v416_v48 = vadd.f32 %v3072_v50, %v121_v11  ;;  %v684_v39 = vmax.f32 %v510_v24, 0.0  ;;  %v3074_v0 = vld [vmem:[#allocation13_spill] sm:$0xff]  ;;  %v503_v54 = vadd.f32 %v3075_v53, %v116_v40  ;;  %v2031_v53 = vld [vmem:[%s3025_s3 + $0x14] sm:$0xf] }
 0x109   :  { %1153 = vmatpush.bf16.msrb.mxu2 %v751_v57  ;;  %v2560_v9 = vpop.f32.mrf.mxu1  ;;  %v414_v57 = vadd.f32 %v3073_v49, %v116_v40  ;;  %v505_v32 = vadd.f32 %v3074_v0, %v121_v11  ;;  %v744_v52 = vpack.c.bf16 %v688_v61, %v686_v45  ;;  %v681_v8 = vmax.f32 %v419_v56, 0.0  ;;  %v2032_v0 = vld [vmem:[%s3025_s3 + $0x14] sm:$0xf0]  ;;  %v2038_v38 = vld [vmem:[%s3025_s3 + $0x44] sm:$0xf0] }
 0x10a   :  { %v2556_v4 = vpop.f32.mrf.mxu0  ;;  %v743_v60 = vpack.c.bf16 %v687_v59, %v685_v62  ;;  %v679_v36 = vmax.f32 %v416_v48, 0.0  ;;  %v409_v26 = vadd.f32 %v3076_v10, %v106_v47  ;;  %v678_v5 = vmax.f32 %v503_v54, 0.0  ;;  %v191_v30 = vpop.permute.xlu1 %190  ;;  %v1897_v54 = vld [vmem:[%s3025_s3 + $0x18] sm:$0xf0]  ;;  %v2036_v10 = vld [vmem:[%s3025_s3 + $0x34] sm:$0xf0] }
 0x10b   :  { %v201_v58 = vpop.permute.xlu0 %200  ;;  %v677_v21 = vmax.f32 %v414_v57, 0.0  ;;  %v741_v1 = vpack.c.bf16 %v683_v3, %v681_v8  ;;  %v680_v25 = vmax.f32 %v505_v32, 0.0  ;;  %v498_v11 = vadd.f32 %v3077_v13, %v106_v47 }
 0x10c   :  { %1332 = vmatpush.bf16.msrb.mxu0 %v750_v55  ;;  %v742_v35 = vpack.c.bf16 %v684_v39, %v682_v63  ;;  %v673_v18 = vmax.f32 %v409_v26, 0.0  ;;  %v675_v43 = vmax.f32 %v411_v15, 0.0  ;;  %v1888_v45 = vor.u32 %v2030_v29, %v1887_v28  ;;  %v1895_v39 = vld [vmem:[%s3025_s3 + $0x10] sm:$0xf]  ;;  %v2040_v29 = vld [vmem:[%s3025_s3 + $0x54] sm:$0xf0] }
 0x10d   :  { %1154 = vmatpush.bf16.msrb.mxu2 %v749_v14  ;;  %v739_v37 = vpack.c.bf16 %v679_v36, %v677_v21  ;;  %v740_v40 = vpack.c.bf16 %v680_v25, %v678_v5  ;;  %v1896_v32 = vor.u32 %v2032_v0, %v1895_v39  ;;  %v1900_v47 = vor.u32 %v2031_v53, %v1897_v54  ;;  %v1911_v21 = vld [vmem:[%s3025_s3 + $0x30] sm:$0xf]  ;;  %v1913_v25 = vld [vmem:[%s3025_s3 + $0x38] sm:$0xf0]  ;;  %v1951_v39 = vld [vmem:[%s3025_s3 + $0x80] sm:$0xf] }
 0x10e   :  { %v737_v20 = vpack.c.bf16 %v675_v43, %v673_v18  ;;  %v2037_v18 = vld [vmem:[%s3025_s3 + $0x44] sm:$0xf]  ;;  %v1927_v28 = vld [vmem:[%s3025_s3 + $0x50] sm:$0xf]  ;;  %v2046_v0 = vld [vmem:[%s3025_s3 + $0x84] sm:$0xf0] }
 0x10f   :  { %v1952_v53 = vor.u32 %v2046_v0, %v1951_v39 }
 0x110   :  { %1333 = vmatpush.bf16.msrb.mxu0 %v748_v51  ;;  %v676_v51 = vmax.f32 %v500_v7, 0.0 }
 0x111   :  { %1155 = vmatpush.bf16.msrb.mxu2 %v747_v22  ;;  %v539_v34 = vpop.f32.mrf.mxu1  ;;  %v674_v22 = vmax.f32 %v498_v11, 0.0 }
 0x112   :  { %v450_v2 = vpop.f32.mrf.mxu0  ;;  %v2646_v5 = vpop.permute.xlu1 %985 }
 0x113   :  { %v451_v31 = vadd.f32 %v450_v2, %v191_v30  ;;  %v186_v59 = vpop.permute.xlu0 %185  ;;  %v738_v24 = vpack.c.bf16 %v676_v51, %v674_v22  ;;  %3080 = vst [vmem:[#allocation23_spill] sm:$0xff] %v2646_v5  ;;  %v2666_v22 = vpop.permute.xlu2 %905  ;;  %v1928_v51 = vor.u32 %v2040_v29, %v1927_v28 }
 0x114   :  { %1334 = vmatpush.bf16.msrb.mxu0 %v746_v17  ;;  %v449_v61 = vadd.f32 %v2556_v4, %v186_v59  ;;  %v538_v56 = vadd.f32 %v2560_v9, %v186_v59  ;;  %v2029_v4 = vld [vmem:[%s3025_s3 + $0x4] sm:$0xf]  ;;  %v1935_v59 = vld [vmem:[%s3025_s3 + $0x60] sm:$0xf] }
 0x115   :  { %1156 = vmatpush.bf16.msrb.mxu2 %v745_v23  ;;  %v540_v23 = vadd.f32 %v539_v34, %v191_v30  ;;  %v707_v63 = vmax.f32 %v451_v31, 0.0  ;;  %v1889_v34 = vld [vmem:[%s3025_s3 + $0x8] sm:$0xf0]  ;;  %v1929_v31 = vld [vmem:[%s3025_s3 + $0x58] sm:$0xf0] }
 0x116   :  { %v705_v48 = vmax.f32 %v449_v61, 0.0  ;;  %v706_v9 = vmax.f32 %v538_v56, 0.0  ;;  %v2041_v61 = vld [vmem:[%s3025_s3 + $0x64] sm:$0xf] }
 0x117   :  { %v708_v3 = vmax.f32 %v540_v23, 0.0  ;;  %v2042_v23 = vld [vmem:[%s3025_s3 + $0x64] sm:$0xf0] }
 0x118   :  { %1335 = vmatpush.bf16.msrb.mxu0 %v744_v52  ;;  %v753_v49 = vpack.c.bf16 %v707_v63, %v705_v48  ;;  %v1903_v52 = vld [vmem:[%s3025_s3 + $0x20] sm:$0xf]  ;;  %v1943_v63 = vld [vmem:[%s3025_s3 + $0x70] sm:$0xf] }
 0x119   :  { %1157 = vmatpush.bf16.msrb.mxu2 %v743_v60  ;;  %v542_v55 = vpop.f32.mrf.mxu1  ;;  %v754_v57 = vpack.c.bf16 %v708_v3, %v706_v9  ;;  %v1892_v60 = vor.u32 %v2029_v4, %v1889_v34  ;;  %v1904_v8 = vor.u32 %v2034_v33, %v1903_v52  ;;  %v2043_v34 = vld [vmem:[%s3025_s3 + $0x74] sm:$0xf]  ;;  %v1945_v9 = vld [vmem:[%s3025_s3 + $0x78] sm:$0xf0]  ;;  %v2045_v52 = vld [vmem:[%s3025_s3 + $0x84] sm:$0xf] }
 0x11a   :  { %v453_v14 = vpop.f32.mrf.mxu0  ;;  %v543_v27 = vadd.f32 %v542_v55, %v2568_v12  ;;  %v1912_v55 = vor.u32 %v2036_v10, %v1911_v21  ;;  %v2656_v15 = vpop.permute.xlu1 %900  ;;  %v1953_v33 = vld [vmem:[%s3025_s3 + $0x88] sm:$0xf0] }
 0x11b   :  { %v454_v44 = vadd.f32 %v453_v14, %v2568_v12  ;;  %v1905_v14 = vld [vmem:[%s3025_s3 + $0x28] sm:$0xf0]  ;;  %v2638_v26 = vpop.permute.xlu0 %910  ;;  %v2678_v30 = vpop.permute.xlu2 %990 }
 0x11c   :  { %1336 = vmatpush.bf16.msrb.mxu0 %v742_v35  ;;  %v710_v62 = vmax.f32 %v543_v27, 0.0  ;;  %v1919_v35 = vld [vmem:[%s3025_s3 + $0x40] sm:$0xf]  ;;  %3083 = vst [vmem:[#allocation19_spill] sm:$0xff] %v2678_v30 }
 0x11d   :  { %1158 = vmatpush.bf16.msrb.mxu2 %v741_v1  ;;  %v709_v17 = vmax.f32 %v454_v44, 0.0  ;;  %v2035_v1 = vld [vmem:[%s3025_s3 + $0x34] sm:$0xf]  ;;  %v1920_v42 = vor.u32 %v2038_v38, %v1919_v35 }
 0x11e   :  { %v1916_v11 = vor.u32 %v2035_v1, %v1913_v25  ;;  %v1959_v25 = vld [vmem:[%s3025_s3 + $0x90] sm:$0xf] }
 0x120   :  { %1337 = vmatpush.bf16.msrb.mxu0 %v740_v40 }
 0x121   :  { %1159 = vmatpush.bf16.msrb.mxu2 %v739_v37  ;;  %v544_v41 = vpop.f32.mrf.mxu1  ;;  %v1921_v37 = vld [vmem:[%s3025_s3 + $0x48] sm:$0xf0] }
 0x122   :  { %v455_v16 = vpop.f32.mrf.mxu0  ;;  %v545_v6 = vadd.f32 %v544_v41, %v201_v58  ;;  %v1924_v40 = vor.u32 %v2037_v18, %v1921_v37  ;;  %v2668_v43 = vpop.permute.xlu1 %885 }
 0x123   :  { %v456_v19 = vadd.f32 %v455_v16, %v201_v58  ;;  %v2033_v58 = vld [vmem:[%s3025_s3 + $0x24] sm:$0xf]  ;;  %v2648_v13 = vpop.permute.xlu0 %895  ;;  %v2039_v16 = vld [vmem:[%s3025_s3 + $0x54] sm:$0xf] }
 0x124   :  { %v712_v12 = vmax.f32 %v545_v6, 0.0  ;;  %1338 = vmatpush.bf16.msrb.mxu0 %v738_v24  ;;  %v1908_v36 = vor.u32 %v2033_v58, %v1905_v14  ;;  %v1932_v41 = vor.u32 %v2039_v16, %v1929_v31 }
 0x125   :  { %v711_v46 = vmax.f32 %v456_v19, 0.0  ;;  %1160 = vmatpush.bf16.msrb.mxu2 %v737_v20  ;;  %v2690_v20 = vpop.permute.xlu2 %975 }
 0x126   :  { %v756_v50 = vpack.c.bf16 %v712_v12, %v710_v62  ;;  %3085 = vst [vmem:[#allocation20_spill] sm:$0xff] %v2690_v20 }
 0x127   :  { %v755_v2 = vpack.c.bf16 %v711_v46, %v709_v17  ;;  %1339 = vmatmul.bf16.vlgmr.msrb.gmra.mxu0 %v1888_v45  ;;  %v1937_v17 = vld [vmem:[%s3025_s3 + $0x68] sm:$0xf0] }
 0x128   :  { %1161 = vmatmul.bf16.vlgmr.msrb.gmra.mxu2 %v1888_v45  ;;  %1426 = vmatpush.bf16.msrb.mxu1 %v756_v50  ;;  %v1936_v45 = vor.u32 %v2042_v23, %v1935_v59  ;;  %v1940_v62 = vor.u32 %v2041_v61, %v1937_v17  ;;  %v2047_v23 = vld [vmem:[%s3025_s3 + $0x94] sm:$0xf] }
 0x129   :  { %1248 = vmatpush.bf16.msrb.mxu3 %v755_v2  ;;  %v2044_v2 = vld [vmem:[%s3025_s3 + $0x74] sm:$0xf0] }
 0x12a   :  { %v2680_v27 = vpop.permute.xlu1 %970  ;;  %v1944_v50 = vor.u32 %v2044_v2, %v1943_v63 }
 0x12b   :  { %v2658_v7 = vpop.permute.xlu0 %980  ;;  %3084 = vst [vmem:[#allocation24_spill] sm:$0xff] %v2680_v27 }
 0x12c   :  { %1427 = vmatpush.bf16.msrb.mxu1 %v754_v57  ;;  %3081 = vst [vmem:[#allocation22_spill] sm:$0xff] %v2658_v7 }
 0x12d   :  { %1249 = vmatpush.bf16.msrb.mxu3 %v753_v49  ;;  %v2708_v46 = vpop.permute.xlu2 %890  ;;  %v1948_v49 = vor.u32 %v2043_v34, %v1945_v9 }
 0x12f   :  { %1428 = vmatmul.bf16.vlgmr.msrb.gmra.mxu1 %v1892_v60 }
 0x130   :  { %1250 = vmatmul.bf16.vlgmr.msrb.gmra.mxu3 %v1892_v60 }
 0x132   :  { %v2698_v6 = vpop.permute.xlu1 %955 }
 0x133   :  { %v2670_v44 = vpop.permute.xlu0 %965  ;;  %3086 = vst [vmem:[#allocation21_spill] sm:$0xff] %v2698_v6 }
 0x134   :  { %3082 = vst [vmem:[#allocation25_spill] sm:$0xff] %v2670_v44 }
 0x135   :  { %v2720_v3 = vpop.permute.xlu2 %875 }
 0x137   :  { %1344 = vmatmul.bf16.gmra.mxu0 %v1896_v32 }
 0x138   :  { %1166 = vmatmul.bf16.gmra.mxu2 %v1896_v32 }
 0x13a   :  { %v2710_v56 = vpop.permute.xlu1 %870 }
 0x13b   :  { %v2688_v19 = vpop.permute.xlu0 %880 }
 0x13d   :  { %v2732_v57 = vpop.permute.xlu2 %960 }
 0x13e   :  { %3087 = vst [vmem:[#allocation18_spill] sm:$0xff] %v2732_v57 }
 0x13f   :  { %1433 = vmatmul.bf16.gmra.mxu1 %v1900_v47 }
 0x140   :  { %1255 = vmatmul.bf16.gmra.mxu3 %v1900_v47 }
 0x142   :  { %v2722_v48 = vpop.permute.xlu1 %855 }
 0x143   :  { %v2700_v24 = vpop.permute.xlu0 %865 }
 0x145   :  { %v2744_v47 = vpop.permute.xlu2 %945 }
 0x147   :  { %1349 = vmatmul.bf16.gmra.mxu0 %v1904_v8 }
 0x148   :  { %1171 = vmatmul.bf16.gmra.mxu2 %v1904_v8 }
 0x14a   :  { %v2734_v60 = vpop.permute.xlu1 %940 }
 0x14b   :  { %v2712_v12 = vpop.permute.xlu0 %950 }
 0x14d   :  { %v2760_v35 = vpop.permute.xlu2 %860 }
 0x14f   :  { %1438 = vmatmul.bf16.gmra.mxu1 %v1908_v36 }
 0x150   :  { %1260 = vmatmul.bf16.gmra.mxu3 %v1908_v36  ;;  %v1956_v36 = vor.u32 %v2045_v52, %v1953_v33  ;;  %v1967_v33 = vld [vmem:[%s3025_s3 + $0xa0] sm:$0xf] }
 0x152   :  { %v2752_v8 = vpop.permute.xlu1 %925 }
 0x153   :  { %v2724_v4 = vpop.permute.xlu0 %935 }
 0x155   :  { %v846_v2 = vpop.permute.xlu2 %845 }
 0x157   :  { %1354 = vmatmul.bf16.gmra.mxu0 %v1912_v55 }
 0x158   :  { %1176 = vmatmul.bf16.gmra.mxu2 %v1912_v55 }
 0x15a   :  { %v841_v37 = vpop.permute.xlu1 %840 }
 0x15b   :  { %v2742_v32 = vpop.permute.xlu0 %850 }
 0x15f   :  { %1443 = vmatmul.bf16.gmra.mxu1 %v1916_v11 }
 0x160   :  { %1265 = vmatmul.bf16.gmra.mxu3 %v1916_v11  ;;  %v2048_v11 = vld [vmem:[%s3025_s3 + $0x94] sm:$0xf0] }
 0x161   :  { %v1960_v28 = vor.u32 %v2048_v11, %v1959_v25 }
 0x163   :  { %v836_v14 = vpop.permute.xlu0 %835 }
 0x167   :  { %1359 = vmatmul.bf16.gmra.mxu0 %v1920_v42 }
 0x168   :  { %1181 = vmatmul.bf16.gmra.mxu2 %v1920_v42 }
 0x16f   :  { %1448 = vmatmul.bf16.gmra.mxu1 %v1924_v40 }
 0x170   :  { %1270 = vmatmul.bf16.gmra.mxu3 %v1924_v40 }
 0x177   :  { %1364 = vmatmul.bf16.gmra.mxu0 %v1928_v51 }
 0x178   :  { %1186 = vmatmul.bf16.gmra.mxu2 %v1928_v51 }
 0x17f   :  { %1453 = vmatmul.bf16.gmra.mxu1 %v1932_v41 }
 0x180   :  { %1275 = vmatmul.bf16.gmra.mxu3 %v1932_v41 }
 0x187   :  { %1369 = vmatmul.bf16.gmra.mxu0 %v1936_v45 }
 0x188   :  { %1191 = vmatmul.bf16.gmra.mxu2 %v1936_v45  ;;  %v1961_v45 = vld [vmem:[%s3025_s3 + $0x98] sm:$0xf0] }
 0x189   :  { %v1964_v34 = vor.u32 %v2047_v23, %v1961_v45 }
 0x18f   :  { %1458 = vmatmul.bf16.gmra.mxu1 %v1940_v62 }
 0x190   :  { %1280 = vmatmul.bf16.gmra.mxu3 %v1940_v62 }
 0x197   :  { %1374 = vmatmul.bf16.gmra.mxu0 %v1944_v50 }
 0x198   :  { %1196 = vmatmul.bf16.gmra.mxu2 %v1944_v50 }
 0x19f   :  { %1463 = vmatmul.bf16.gmra.mxu1 %v1948_v49 }
 0x1a0   :  { %1285 = vmatmul.bf16.gmra.mxu3 %v1948_v49 }
 0x1a4   :  { %v1340_v54 = vpop.f32.mrf.mxu0 }
 0x1a5   :  { %v1341_v21 = vadd.f32 %v1340_v54, %v836_v14 }
 0x1a7   :  { %1379 = vmatmul.bf16.gmra.mxu0 %v1952_v53 }
 0x1a8   :  { %1201 = vmatmul.bf16.gmra.mxu2 %v1952_v53 }
 0x1ab   :  { %v1162_v58 = vpop.f32.mrf.mxu2 }
 0x1ac   :  { %v1342_v10 = vpop.f32.mrf.mxu0  ;;  %v1429_v55 = vpop.f32.mrf.mxu1  ;;  %v1163_v38 = vadd.f32 %v1162_v58, %v836_v14  ;;  %v2050_v58 = vld [vmem:[%s3025_s3 + $0xa4] sm:$0xf0] }
 0x1ad   :  { %v1430_v1 = vadd.f32 %v1429_v55, %v1341_v21  ;;  %v1343_v29 = vadd.f32 %v1342_v10, %v841_v37  ;;  %v1968_v55 = vor.u32 %v2050_v58, %v1967_v33 }
 0x1af   :  { %1468 = vmatmul.bf16.gmra.mxu1 %v1956_v36  ;;  %v1606_v41 = vmax.f32 %v1430_v1, 0.0 }
 0x1b0   :  { %1290 = vmatmul.bf16.gmra.mxu3 %v1956_v36 }
 0x1b3   :  { %v1164_v42 = vpop.f32.mrf.mxu2  ;;  %v1251_v18 = vpop.f32.mrf.mxu3 }
 0x1b4   :  { %v1252_v40 = vadd.f32 %v1251_v18, %v1163_v38  ;;  %v1345_v51 = vpop.f32.mrf.mxu0  ;;  %v1431_v16 = vpop.f32.mrf.mxu1  ;;  %v1165_v61 = vadd.f32 %v1164_v42, %v841_v37  ;;  %v2049_v37 = vld [vmem:[%s3025_s3 + $0xa4] sm:$0xf] }
 0x1b5   :  { %v1432_v31 = vadd.f32 %v1431_v16, %v1343_v29  ;;  %v1346_v9 = vadd.f32 %v1345_v51, %v846_v2 }
 0x1b6   :  { %v1605_v49 = vmax.f32 %v1252_v40, 0.0  ;;  %v1969_v40 = vld [vmem:[%s3025_s3 + $0xa8] sm:$0xf0] }
 0x1b7   :  { %v1608_v59 = vmax.f32 %v1432_v31, 0.0  ;;  %1384 = vmatmul.bf16.gmra.mxu0 %v1960_v28 }
 0x1b8   :  { %1206 = vmatmul.bf16.gmra.mxu2 %v1960_v28 }
 0x1b9   :  { %v2768_v63 = vpack.c.bf16 %v1608_v59, %v1606_v41  ;;  %v1972_v41 = vor.u32 %v2049_v37, %v1969_v40 }
 0x1bb   :  { %v1167_v17 = vpop.f32.mrf.mxu2  ;;  %v1253_v62 = vpop.f32.mrf.mxu3  ;;  %3088 = vst [vmem:[#allocation15_spill] sm:$0xff] %v2768_v63 }
 0x1bc   :  { %v1254_v50 = vadd.f32 %v1253_v62, %v1165_v61  ;;  %v1347_v0 = vpop.f32.mrf.mxu0  ;;  %v1434_v53 = vpop.f32.mrf.mxu1  ;;  %v1168_v14 = vadd.f32 %v1167_v17, %v846_v2 }
 0x1bd   :  { %v1435_v54 = vadd.f32 %v1434_v53, %v1346_v9  ;;  %v1348_v1 = vadd.f32 %v1347_v0, %v2742_v32 }
 0x1be   :  { %v1607_v39 = vmax.f32 %v1254_v50, 0.0  ;;  %v2052_v50 = vld [vmem:[%s3025_s3 + $0xb4] sm:$0xf0] }
 0x1bf   :  { %1473 = vmatmul.bf16.gmra.mxu1 %v1964_v34  ;;  %v1610_v42 = vmax.f32 %v1435_v54, 0.0 }
 0x1c0   :  { %1295 = vmatmul.bf16.gmra.mxu3 %v1964_v34  ;;  %v2770_v52 = vpack.c.bf16 %v1607_v39, %v1605_v49 }
 0x1c3   :  { %v1169_v36 = vpop.f32.mrf.mxu2  ;;  %v1256_v21 = vpop.f32.mrf.mxu3 }
 0x1c4   :  { %v1257_v10 = vadd.f32 %v1256_v21, %v1168_v14  ;;  %v1350_v25 = vpop.f32.mrf.mxu0  ;;  %v1436_v11 = vpop.f32.mrf.mxu1  ;;  %v1170_v28 = vadd.f32 %v1169_v36, %v2742_v32  ;;  %v1975_v32 = vld [vmem:[%s3025_s3 + $0xb0] sm:$0xf]  ;;  %v2051_v21 = vld [vmem:[%s3025_s3 + $0xb4] sm:$0xf] }
 0x1c5   :  { %v1437_v38 = vadd.f32 %v1436_v11, %v1348_v1  ;;  %v1351_v59 = vadd.f32 %v1350_v25, %v2722_v48  ;;  %v1976_v0 = vor.u32 %v2052_v50, %v1975_v32 }
 0x1c6   :  { %v1609_v23 = vmax.f32 %v1257_v10, 0.0 }
 0x1c7   :  { %v1612_v18 = vmax.f32 %v1437_v38, 0.0  ;;  %1389 = vmatmul.bf16.gmra.mxu0 %v1968_v55 }
 0x1c8   :  { %1211 = vmatmul.bf16.gmra.mxu2 %v1968_v55 }
 0x1c9   :  { %v2786_v16 = vpack.c.bf16 %v1612_v18, %v1610_v42 }
 0x1cb   :  { %v1172_v29 = vpop.f32.mrf.mxu2  ;;  %v1258_v51 = vpop.f32.mrf.mxu3 }
 0x1cc   :  { %v1259_v31 = vadd.f32 %v1258_v51, %v1170_v28  ;;  %v1352_v61 = vpop.f32.mrf.mxu0  ;;  %v1439_v17 = vpop.f32.mrf.mxu1  ;;  %v1173_v34 = vadd.f32 %v1172_v29, %v2722_v48  ;;  %v1977_v48 = vld [vmem:[%s3025_s3 + $0xb8] sm:$0xf0] }
 0x1cd   :  { %v1440_v62 = vadd.f32 %v1439_v17, %v1351_v59  ;;  %v1353_v53 = vadd.f32 %v1352_v61, %v2760_v35  ;;  %v1980_v38 = vor.u32 %v2051_v21, %v1977_v48 }
 0x1ce   :  { %v1611_v45 = vmax.f32 %v1259_v31, 0.0  ;;  %v2054_v31 = vld [vmem:[%s3025_s3 + $0xc4] sm:$0xf0] }
 0x1cf   :  { %1478 = vmatmul.bf16.gmra.mxu1 %v1972_v41  ;;  %v1614_v14 = vmax.f32 %v1440_v62, 0.0 }
 0x1d0   :  { %1300 = vmatmul.bf16.gmra.mxu3 %v1972_v41  ;;  %v2789_v2 = vpack.c.bf16 %v1611_v45, %v1609_v23 }
 0x1d3   :  { %v1174_v9 = vpop.f32.mrf.mxu2  ;;  %v1261_v49 = vpop.f32.mrf.mxu3 }
 0x1d4   :  { %v1262_v39 = vadd.f32 %v1261_v49, %v1173_v34  ;;  %v1355_v54 = vpop.f32.mrf.mxu0  ;;  %v1441_v33 = vpop.f32.mrf.mxu1  ;;  %v1175_v10 = vadd.f32 %v1174_v9, %v2760_v35  ;;  %v1983_v35 = vld [vmem:[%s3025_s3 + $0xc0] sm:$0xf]  ;;  %v2053_v49 = vld [vmem:[%s3025_s3 + $0xc4] sm:$0xf] }
 0x1d5   :  { %v1442_v58 = vadd.f32 %v1441_v33, %v1353_v53  ;;  %v1356_v42 = vadd.f32 %v1355_v54, %v2700_v24  ;;  %v1984_v61 = vor.u32 %v2054_v31, %v1983_v35  ;;  %v2055_v35 = vld [vmem:[%s3025_s3 + $0xd4] sm:$0xf] }
 0x1d6   :  { %v1613_v18 = vmax.f32 %v1262_v39, 0.0 }
 0x1d7   :  { %v1616_v36 = vmax.f32 %v1442_v58, 0.0  ;;  %1394 = vmatmul.bf16.gmra.mxu0 %v1976_v0 }
 0x1d8   :  { %1216 = vmatmul.bf16.gmra.mxu2 %v1976_v0 }
 0x1d9   :  { %v2806_v25 = vpack.c.bf16 %v1616_v36, %v1614_v14 }
 0x1db   :  { %v1177_v55 = vpop.f32.mrf.mxu2  ;;  %v1263_v1 = vpop.f32.mrf.mxu3 }
 0x1dc   :  { %v1264_v11 = vadd.f32 %v1263_v1, %v1175_v10  ;;  %v1357_v40 = vpop.f32.mrf.mxu0  ;;  %v1444_v28 = vpop.f32.mrf.mxu1  ;;  %v1178_v41 = vadd.f32 %v1177_v55, %v2700_v24  ;;  %v1985_v24 = vld [vmem:[%s3025_s3 + $0xc8] sm:$0xf0] }
 0x1dd   :  { %v1445_v29 = vadd.f32 %v1444_v28, %v1356_v42  ;;  %v1358_v17 = vadd.f32 %v1357_v40, %v2710_v56  ;;  %v1988_v58 = vor.u32 %v2053_v49, %v1985_v24  ;;  %v2057_v49 = vld [vmem:[%s3025_s3 + $0xe4] sm:$0xf]  ;;  %v2001_v24 = vld [vmem:[%s3025_s3 + $0xe8] sm:$0xf0] }
 0x1de   :  { %v1615_v37 = vmax.f32 %v1264_v11, 0.0  ;;  %v2056_v11 = vld [vmem:[%s3025_s3 + $0xd4] sm:$0xf0] }
 0x1df   :  { %1483 = vmatmul.bf16.gmra.mxu1 %v1980_v38  ;;  %v1618_v34 = vmax.f32 %v1445_v29, 0.0 }
 0x1e0   :  { %1305 = vmatmul.bf16.gmra.mxu3 %v1980_v38  ;;  %v2809_v51 = vpack.c.bf16 %v1615_v37, %v1613_v18 }
 0x1e3   :  { %v1179_v59 = vpop.f32.mrf.mxu2  ;;  %v1266_v23 = vpop.f32.mrf.mxu3 }
 0x1e4   :  { %v1267_v45 = vadd.f32 %v1266_v23, %v1178_v41  ;;  %v1360_v62 = vpop.f32.mrf.mxu0  ;;  %v1446_v32 = vpop.f32.mrf.mxu1  ;;  %v1180_v39 = vadd.f32 %v1179_v59, %v2710_v56  ;;  %v1991_v56 = vld [vmem:[%s3025_s3 + $0xd0] sm:$0xf] }
 0x1e5   :  { %v1447_v50 = vadd.f32 %v1446_v32, %v1358_v17  ;;  %v1361_v14 = vadd.f32 %v1360_v62, %v2720_v3  ;;  %v1992_v40 = vor.u32 %v2056_v11, %v1991_v56  ;;  %v2058_v17 = vld [vmem:[%s3025_s3 + $0xe4] sm:$0xf0] }
 0x1e6   :  { %v1617_v36 = vmax.f32 %v1267_v45, 0.0 }
 0x1e7   :  { %v1620_v9 = vmax.f32 %v1447_v50, 0.0  ;;  %1399 = vmatmul.bf16.gmra.mxu0 %v1984_v61 }
 0x1e8   :  { %1221 = vmatmul.bf16.gmra.mxu2 %v1984_v61  ;;  %v1999_v61 = vld [vmem:[%s3025_s3 + $0xe0] sm:$0xf] }
 0x1e9   :  { %v2826_v54 = vpack.c.bf16 %v1620_v9, %v1618_v34  ;;  %v2000_v50 = vor.u32 %v2058_v17, %v1999_v61  ;;  %v2059_v17 = vld [vmem:[%s3025_s3 + $0xf4] sm:$0xf] }
 0x1eb   :  { %v1182_v0 = vpop.f32.mrf.mxu2  ;;  %v1268_v53 = vpop.f32.mrf.mxu3 }
 0x1ec   :  { %v1269_v33 = vadd.f32 %v1268_v53, %v1180_v39  ;;  %v2829_v48 = vpop.f32.mrf.mxu0  ;;  %v1449_v10 = vpop.f32.mrf.mxu1  ;;  %v1183_v38 = vadd.f32 %v1182_v0, %v2720_v3  ;;  %v1993_v3 = vld [vmem:[%s3025_s3 + $0xd8] sm:$0xf0]  ;;  %v2004_v53 = vor.u32 %v2057_v49, %v2001_v24 }
 0x1ed   :  { %v2831_v55 = vadd.f32 %v1449_v10, %v1361_v14  ;;  %v1996_v59 = vor.u32 %v2055_v35, %v1993_v3  ;;  %v2007_v14 = vld [vmem:[%s3025_s3 + $0xf0] sm:$0xf] }
 0x1ee   :  { %v1619_v21 = vmax.f32 %v1269_v33, 0.0 }
 0x1ef   :  { %1488 = vmatmul.bf16.gmra.mxu1 %v1988_v58 }
 0x1f0   :  { %1310 = vmatmul.bf16.gmra.mxu3 %v1988_v58  ;;  %v2833_v1 = vpack.c.bf16 %v1619_v21, %v1617_v36  ;;  %v2060_v36 = vld [vmem:[%s3025_s3 + $0xf4] sm:$0xf0] }
 0x1f1   :  { %v2008_v11 = vor.u32 %v2060_v36, %v2007_v14  ;;  %v2902_v14 = vpop.permute.xlu2 %930 }
 0x1f3   :  { %v2842_v42 = vpop.f32.mrf.mxu2  ;;  %v1271_v18 = vpop.f32.mrf.mxu3 }
 0x1f4   :  { %v2844_v37 = vadd.f32 %v1271_v18, %v1183_v38  ;;  %v2846_v28 = vpop.f32.mrf.mxu0  ;;  %v2848_v29 = vpop.f32.mrf.mxu1 }
 0x1f7   :  { %1404 = vmatmul.bf16.gmra.mxu0 %v1992_v40 }
 0x1f8   :  { %1226 = vmatmul.bf16.gmra.mxu2 %v1992_v40 }
 0x1fb   :  { %v2856_v31 = vpop.f32.mrf.mxu2  ;;  %v2858_v41 = vpop.f32.mrf.mxu3 }
 0x1fc   :  { %v2860_v23 = vpop.f32.mrf.mxu0  ;;  %v2862_v45 = vpop.f32.mrf.mxu1 }
 0x1ff   :  { %1493 = vmatmul.bf16.gmra.mxu1 %v1996_v59 }
 0x200   :  { %1315 = vmatmul.bf16.gmra.mxu3 %v1996_v59 }
 0x203   :  { %v1189_v62 = vpop.f32.mrf.mxu2  ;;  %v2870_v32 = vpop.f32.mrf.mxu3 }
 0x204   :  { %v1370_v34 = vpop.f32.mrf.mxu0  ;;  %v2872_v9 = vpop.f32.mrf.mxu1  ;;  %v1190_v20 = vadd.f32 %v1189_v62, %v2708_v46 }
 0x205   :  { %v1371_v21 = vadd.f32 %v1370_v34, %v2648_v13 }
 0x207   :  { %1409 = vmatmul.bf16.gmra.mxu0 %v2000_v50 }
 0x208   :  { %1231 = vmatmul.bf16.gmra.mxu2 %v2000_v50  ;;  %v2009_v50 = vld [vmem:[%s3025_s3 + $0xf8] sm:$0xf0] }
 0x20b   :  { %v1192_v39 = vpop.f32.mrf.mxu2  ;;  %v1278_v0 = vpop.f32.mrf.mxu3 }
 0x20c   :  { %v1372_v33 = vpop.f32.mrf.mxu0  ;;  %v1459_v58 = vpop.f32.mrf.mxu1  ;;  %v1193_v57 = vadd.f32 %v1192_v39, %v2648_v13  ;;  %v1185_v13 = vadd.f32 %v2842_v42, %v2688_v19 }
 0x20d   :  { %v1373_v38 = vadd.f32 %v1372_v33, %v2656_v15  ;;  %v1460_v18 = vadd.f32 %v1459_v58, %v1371_v21 }
 0x20f   :  { %1498 = vmatmul.bf16.gmra.mxu1 %v2004_v53  ;;  %v1630_v59 = vmax.f32 %v1460_v18, 0.0 }
 0x210   :  { %1320 = vmatmul.bf16.gmra.mxu3 %v2004_v53  ;;  %v2012_v53 = vor.u32 %v2059_v17, %v2009_v50  ;;  %v916_v50 = vpop.permute.xlu2 %915 }
 0x213   :  { %v1194_v10 = vpop.f32.mrf.mxu2  ;;  %v1281_v56 = vpop.f32.mrf.mxu3 }
 0x214   :  { %v2888_v40 = vpop.f32.mrf.mxu0  ;;  %v1461_v35 = vpop.f32.mrf.mxu1  ;;  %v1282_v30 = vadd.f32 %v1281_v56, %v1193_v57  ;;  %v1274_v56 = vadd.f32 %v2858_v41, %v1185_v13 }
 0x215   :  { %v1462_v3 = vadd.f32 %v1461_v35, %v1373_v38  ;;  %v1195_v35 = vadd.f32 %v1194_v10, %v2656_v15  ;;  %v1188_v15 = vadd.f32 %v2856_v31, %v2668_v43  ;;  %v1279_v10 = vadd.f32 %v1278_v0, %v1190_v20 }
 0x216   :  { %v1623_v42 = vmax.f32 %v1274_v56, 0.0 }
 0x217   :  { %v1632_v61 = vmax.f32 %v1462_v3, 0.0  ;;  %1414 = vmatmul.bf16.gmra.mxu0 %v2008_v11  ;;  %v1277_v39 = vadd.f32 %v2870_v32, %v1188_v15 }
 0x218   :  { %1236 = vmatmul.bf16.gmra.mxu2 %v2008_v11 }
 0x219   :  { %v2896_v34 = vpack.c.bf16 %v1632_v61, %v1630_v59  ;;  %v1625_v20 = vmax.f32 %v1277_v39, 0.0 }
 0x21b   :  { %v1197_v49 = vpop.f32.mrf.mxu2  ;;  %v1283_v24 = vpop.f32.mrf.mxu3 }
 0x21c   :  { %v2898_v33 = vpop.f32.mrf.mxu0  ;;  %v2900_v58 = vpop.f32.mrf.mxu1  ;;  %v1198_v18 = vadd.f32 %v1197_v49, %v2666_v22 }
 0x21d   :  { %v1378_v39 = vadd.f32 %v2898_v33, %v2638_v26 }
 0x21f   :  { %1503 = vmatmul.bf16.gmra.mxu1 %v2012_v53 }
 0x220   :  { %1325 = vmatmul.bf16.gmra.mxu3 %v2012_v53  ;;  %v1284_v53 = vadd.f32 %v1283_v24, %v1195_v35  ;;  %v1629_v24 = vmax.f32 %v1282_v30, 0.0 }
 0x223   :  { %v1199_v36 = vpop.f32.mrf.mxu2  ;;  %v1286_v21 = vpop.f32.mrf.mxu3 }
 0x224   :  { %v1380_v11 = vpop.f32.mrf.mxu0  ;;  %v2904_v38 = vpop.f32.mrf.mxu1  ;;  %v1200_v3 = vadd.f32 %v1199_v36, %v2638_v26  ;;  %v1287_v59 = vadd.f32 %v1286_v21, %v1198_v18  ;;  %v1631_v36 = vmax.f32 %v1284_v53, 0.0 }
 0x225   :  { %v1381_v27 = vadd.f32 %v1380_v11, %v916_v50 }
 0x226   :  { %v1633_v7 = vmax.f32 %v1287_v59, 0.0  ;;  %v1681_v18 = vpack.c.bf16 %v1631_v36, %v1629_v24  ;;  %v1621_v59 = vmax.f32 %v2844_v37, 0.0 }
 0x22b   :  { %v1202_v61 = vpop.f32.mrf.mxu2  ;;  %v1288_v17 = vpop.f32.mrf.mxu3 }
 0x22c   :  { %v1289_v44 = vadd.f32 %v1288_v17, %v1200_v3  ;;  %v1382_v6 = vpop.f32.mrf.mxu0  ;;  %v1469_v49 = vpop.f32.mrf.mxu1  ;;  %v1203_v11 = vadd.f32 %v1202_v61, %v916_v50 }
 0x22d   :  { %v1470_v63 = vadd.f32 %v1469_v49, %v1381_v27  ;;  %v1627_v27 = vmax.f32 %v1279_v10, 0.0  ;;  %v1677_v49 = vpack.c.bf16 %v1623_v42, %v1621_v59 }
 0x22e   :  { %v1635_v5 = vmax.f32 %v1289_v44, 0.0  ;;  %v921_v44 = vpop.permute.xlu0 %920 }
 0x22f   :  { %v1383_v31 = vadd.f32 %v1382_v6, %v921_v44  ;;  %v1679_v3 = vpack.c.bf16 %v1627_v27, %v1625_v20  ;;  %v1638_v32 = vmax.f32 %v1470_v63, 0.0 }
 0x230   :  { %v1683_v21 = vpack.c.bf16 %v1635_v5, %v1633_v7 }
 0x232   :  { %1710 = vmatpush.bf16.msra.mxu2 %v1683_v21 }
 0x233   :  { %v1204_v57 = vpop.f32.mrf.mxu2  ;;  %v1291_v62 = vpop.f32.mrf.mxu3 }
 0x234   :  { %v1292_v35 = vadd.f32 %v1291_v62, %v1203_v11  ;;  %v1385_v0 = vpop.f32.mrf.mxu0  ;;  %v1471_v5 = vpop.f32.mrf.mxu1  ;;  %v1205_v61 = vadd.f32 %v1204_v57, %v921_v44  ;;  %v1376_v62 = vadd.f32 %v2888_v40, %v2666_v22  ;;  %v1467_v44 = vadd.f32 %v2904_v38, %v1378_v39 }
 0x235   :  { %v1472_v7 = vadd.f32 %v1471_v5, %v1383_v31  ;;  %v1386_v6 = vadd.f32 %v1385_v0, %v2752_v8  ;;  %v1368_v22 = vadd.f32 %v2860_v23, %v2708_v46  ;;  %v1363_v46 = vadd.f32 %v2829_v48, %v2688_v19 }
 0x236   :  { %1711 = vmatpush.bf16.msra.mxu2 %v1681_v18  ;;  %v1637_v15 = vmax.f32 %v1292_v35, 0.0  ;;  %v1636_v35 = vmax.f32 %v1467_v44, 0.0 }
 0x237   :  { %v1640_v30 = vmax.f32 %v1472_v7, 0.0 }
 0x239   :  { %v2918_v17 = vpack.c.bf16 %v1640_v30, %v1638_v32 }
 0x23a   :  { %1712 = vmatpush.bf16.msra.mxu2 %v1679_v3 }
 0x23b   :  { %v1207_v41 = vpop.f32.mrf.mxu2  ;;  %v1293_v50 = vpop.f32.mrf.mxu3 }
 0x23c   :  { %v1294_v53 = vadd.f32 %v1293_v50, %v1205_v61  ;;  %v1387_v36 = vpop.f32.mrf.mxu0  ;;  %v1474_v21 = vpop.f32.mrf.mxu1  ;;  %v1208_v37 = vadd.f32 %v1207_v41, %v2752_v8  ;;  %v1465_v8 = vadd.f32 %v2900_v58, %v1376_v62  ;;  %v1457_v58 = vadd.f32 %v2872_v9, %v1368_v22 }
 0x23d   :  { %v1475_v13 = vadd.f32 %v1474_v21, %v1386_v6  ;;  %v1388_v56 = vadd.f32 %v1387_v36, %v2902_v14  ;;  %v1622_v6 = vmax.f32 %v2831_v55, 0.0 }
 0x23e   :  { %v1639_v10 = vmax.f32 %v1294_v53, 0.0  ;;  %1713 = vmatpush.bf16.msra.mxu2 %v1677_v49  ;;  %v1634_v40 = vmax.f32 %v1465_v8, 0.0 }
 0x23f   :  { %v1642_v31 = vmax.f32 %v1475_v13, 0.0 }
 0x240   :  { %v2921_v63 = vpack.c.bf16 %v1639_v10, %v1637_v15  ;;  %v1684_v7 = vpack.c.bf16 %v1636_v35, %v1634_v40 }
 0x242   :  { %1714 = vmatpush.bf16.msra.mxu2 %v2833_v1 }
 0x243   :  { %v1209_v24 = vpop.f32.mrf.mxu2  ;;  %v1296_v11 = vpop.f32.mrf.mxu3 }
 0x244   :  { %v1297_v57 = vadd.f32 %v1296_v11, %v1208_v37  ;;  %v1390_v27 = vpop.f32.mrf.mxu0  ;;  %v1476_v18 = vpop.f32.mrf.mxu1  ;;  %v1210_v33 = vadd.f32 %v1209_v24, %v2902_v14 }
 0x245   :  { %v1477_v1 = vadd.f32 %v1476_v18, %v1388_v56  ;;  %v1391_v42 = vadd.f32 %v1390_v27, %v2724_v4 }
 0x246   :  { %1715 = vmatpush.bf16.msra.mxu2 %v2809_v51  ;;  %v1366_v51 = vadd.f32 %v2846_v28, %v2668_v43  ;;  %v1641_v14 = vmax.f32 %v1297_v57, 0.0  ;;  %v1452_v43 = vadd.f32 %v2848_v29, %v1363_v46  ;;  %v1628_v28 = vmax.f32 %v1457_v58, 0.0 }
 0x247   :  { %v1644_v26 = vmax.f32 %v1477_v1, 0.0 }
 0x248   :  { %v1455_v23 = vadd.f32 %v2862_v45, %v1366_v51  ;;  %v1624_v53 = vmax.f32 %v1452_v43, 0.0 }
 0x249   :  { %v2937_v38 = vpack.c.bf16 %v1644_v26, %v1642_v31 }
 0x24a   :  { %1716 = vmatpush.bf16.msra.mxu2 %v2789_v2  ;;  %v1626_v61 = vmax.f32 %v1455_v23, 0.0  ;;  %v1678_v29 = vpack.c.bf16 %v1624_v53, %v1622_v6 }
 0x24b   :  { %v1212_v20 = vpop.f32.mrf.mxu2  ;;  %v1298_v0 = vpop.f32.mrf.mxu3 }
 0x24c   :  { %v1299_v5 = vadd.f32 %v1298_v0, %v1210_v33  ;;  %v1392_v2 = vpop.f32.mrf.mxu0  ;;  %v1479_v32 = vpop.f32.mrf.mxu1  ;;  %v1213_v9 = vadd.f32 %v1212_v20, %v2724_v4  ;;  %v1680_v49 = vpack.c.bf16 %v1628_v28, %v1626_v61  ;;  %v3089_v20 = vld [vmem:[#allocation15_spill] sm:$0xff] }
 0x24d   :  { %v1480_v30 = vadd.f32 %v1479_v32, %v1391_v42  ;;  %v1393_v19 = vadd.f32 %v1392_v2, %v2734_v60 }
 0x24e   :  { %v1643_v3 = vmax.f32 %v1299_v5, 0.0  ;;  %1717 = vmatpush.bf16.msra.mxu2 %v2770_v52 }
 0x24f   :  { %v1646_v10 = vmax.f32 %v1480_v30, 0.0 }
 0x250   :  { %v2947_v59 = vpack.c.bf16 %v1643_v3, %v1641_v14 }
 0x252   :  { %1736 = vmatpush.bf16.msrb.mxu2 %v1684_v7 }
 0x253   :  { %v1214_v41 = vpop.f32.mrf.mxu2  ;;  %v1301_v50 = vpop.f32.mrf.mxu3 }
 0x254   :  { %v1302_v52 = vadd.f32 %v1301_v50, %v1213_v9  ;;  %v1395_v48 = vpop.f32.mrf.mxu0  ;;  %v1481_v45 = vpop.f32.mrf.mxu1  ;;  %v1215_v4 = vadd.f32 %v1214_v41, %v2734_v60 }
 0x255   :  { %v1482_v15 = vadd.f32 %v1481_v45, %v1393_v19  ;;  %v1396_v39 = vadd.f32 %v1395_v48, %v2744_v47 }
 0x256   :  { %1737 = vmatpush.bf16.msrb.mxu2 %v2896_v34  ;;  %v1645_v24 = vmax.f32 %v1302_v52, 0.0 }
 0x257   :  { %v1648_v36 = vmax.f32 %v1482_v15, 0.0 }
 0x259   :  { %v2955_v21 = vpack.c.bf16 %v1648_v36, %v1646_v10  ;;  %v3091_v36 = vld [vmem:[#allocation23_spill] sm:$0xff] }
 0x25a   :  { %1738 = vmatpush.bf16.msrb.mxu2 %v1680_v49 }
 0x25b   :  { %v1217_v13 = vpop.f32.mrf.mxu2  ;;  %v1303_v34 = vpop.f32.mrf.mxu3 }
 0x25c   :  { %v1304_v37 = vadd.f32 %v1303_v34, %v1215_v4  ;;  %v1484_v57 = vpop.f32.mrf.mxu1  ;;  %v1397_v44 = vpop.f32.mrf.mxu0  ;;  %v1218_v56 = vadd.f32 %v1217_v13, %v2744_v47  ;;  %v3092_v13 = vld [vmem:[#allocation22_spill] sm:$0xff] }
 0x25d   :  { %v1485_v62 = vadd.f32 %v1484_v57, %v1396_v39  ;;  %v1398_v8 = vadd.f32 %v1397_v44, %v2712_v12  ;;  %v3094_v57 = vld [vmem:[#allocation20_spill] sm:$0xff] }
 0x25e   :  { %1739 = vmatpush.bf16.msrb.mxu2 %v1678_v29  ;;  %v1647_v11 = vmax.f32 %v1304_v37, 0.0  ;;  %v3093_v37 = vld [vmem:[#allocation19_spill] sm:$0xff] }
 0x25f   :  { %v1650_v31 = vmax.f32 %v1485_v62, 0.0 }
 0x260   :  { %v2959_v55 = vpack.c.bf16 %v1647_v11, %v1645_v24 }
 0x262   :  { %1740 = vmatpush.bf16.msrb.mxu2 %v2826_v54 }
 0x263   :  { %v1219_v60 = vpop.f32.mrf.mxu2  ;;  %v1306_v27 = vpop.f32.mrf.mxu3 }
 0x264   :  { %v1307_v18 = vadd.f32 %v1306_v27, %v1218_v56  ;;  %v1486_v1 = vpop.f32.mrf.mxu1  ;;  %v1220_v54 = vadd.f32 %v1219_v60, %v2712_v12  ;;  %v1400_v33 = vpop.f32.mrf.mxu0  ;;  %v3095_v27 = vld [vmem:[#allocation24_spill] sm:$0xff] }
 0x265   :  { %v1487_v35 = vadd.f32 %v1486_v1, %v1398_v8 }
 0x266   :  { %1741 = vmatpush.bf16.msrb.mxu2 %v2806_v25  ;;  %v3090_v25 = vld [vmem:[#allocation21_spill] sm:$0xff]  ;;  %v1649_v51 = vmax.f32 %v1307_v18, 0.0 }
 0x267   :  { %v1652_v26 = vmax.f32 %v1487_v35, 0.0  ;;  %v1401_v5 = vadd.f32 %v1400_v33, %v3090_v25 }
 0x269   :  { %v2966_v22 = vpack.c.bf16 %v1652_v26, %v1650_v31  ;;  %v1701_v26 = vld [vmem:[%s3027_s5] sm:$0x3] }
 0x26a   :  { %1742 = vmatpush.bf16.msrb.mxu2 %v2786_v16  ;;  %1705 = vst [vmem:[#allocation1] ss:$9 sm:$0xff] %v1701_v26 }
 0x26b   :  { %v1222_v40 = vpop.f32.mrf.mxu2  ;;  %v1308_v47 = vpop.f32.mrf.mxu3 }
 0x26c   :  { %v1309_v0 = vadd.f32 %v1308_v47, %v1220_v54  ;;  %v1489_v7 = vpop.f32.mrf.mxu1  ;;  %v1223_v14 = vadd.f32 %v1222_v40, %v3090_v25  ;;  %v2975_v43 = vpop.f32.mrf.mxu0  ;;  %v3096_v54 = vld [vmem:[#allocation25_spill] sm:$0xff] }
 0x26d   :  { %v2970_v42 = vadd.f32 %v1489_v7, %v1401_v5 }
 0x26e   :  { %1743 = vmatpush.bf16.msrb.mxu2 %v3089_v20  ;;  %v1651_v58 = vmax.f32 %v1309_v0, 0.0  ;;  %v3097_v0 = vld [vmem:[#allocation18_spill] sm:$0xff] }
 0x270   :  { %v2972_v16 = vpack.c.bf16 %v1651_v58, %v1649_v51 }
 0x273   :  { %v1224_v12 = vpop.f32.mrf.mxu2  ;;  %v1311_v3 = vpop.f32.mrf.mxu3 }
 0x274   :  { %v1312_v2 = vadd.f32 %v1311_v3, %v1223_v14  ;;  %v2977_v28 = vpop.f32.mrf.mxu1  ;;  %v2979_v41 = vpop.f32.mrf.mxu0  ;;  %v1225_v25 = vadd.f32 %v1224_v12, %v3097_v0 }
 0x27b   :  { %v1227_v32 = vpop.f32.mrf.mxu2  ;;  %v1313_v46 = vpop.f32.mrf.mxu3 }
 0x27c   :  { %v2981_v50 = vpop.f32.mrf.mxu1  ;;  %v1407_v49 = vpop.f32.mrf.mxu0  ;;  %v1228_v33 = vadd.f32 %v1227_v32, %v3096_v54  ;;  %v1314_v58 = vadd.f32 %v1313_v46, %v1225_v25  ;;  %v1653_v32 = vmax.f32 %v1312_v2, 0.0 }
 0x283   :  { %v1229_v23 = vpop.f32.mrf.mxu2  ;;  %v1316_v30 = vpop.f32.mrf.mxu3 }
 0x284   :  { %v2983_v19 = vpop.f32.mrf.mxu1  ;;  %v1410_v6 = vpop.f32.mrf.mxu0  ;;  %v1230_v18 = vadd.f32 %v1229_v23, %v3095_v27  ;;  %v1317_v5 = vadd.f32 %v1316_v30, %v1228_v33 }
 0x285   :  { %v1411_v2 = vadd.f32 %v1410_v6, %v3094_v57  ;;  %v1403_v6 = vadd.f32 %v2975_v43, %v3097_v0 }
 0x286   :  { %v1657_v3 = vmax.f32 %v1317_v5, 0.0 }
 0x28b   :  { %v1232_v9 = vpop.f32.mrf.mxu2  ;;  %v1318_v61 = vpop.f32.mrf.mxu3 }
 0x28c   :  { %v1499_v29 = vpop.f32.mrf.mxu1  ;;  %v1233_v62 = vadd.f32 %v1232_v9, %v3094_v57  ;;  %v1412_v44 = vpop.f32.mrf.mxu0  ;;  %v1319_v40 = vadd.f32 %v1318_v61, %v1230_v18  ;;  %v1706_v9 = vld [vmem:[#allocation1] sm:$0xff] }
 0x28d   :  { %1718 = vmatmul.bf16.vlgmr.msra.gmra.mxu2 %v1706_v9 }
 0x28e   :  { %v1659_v7 = vmax.f32 %v1319_v40, 0.0 }
 0x293   :  { %v1234_v52 = vpop.f32.mrf.mxu2  ;;  %v1321_v53 = vpop.f32.mrf.mxu3 }
 0x294   :  { %v1235_v34 = vadd.f32 %v1234_v52, %v3092_v13  ;;  %v1322_v8 = vadd.f32 %v1321_v53, %v1233_v62  ;;  %v1501_v1 = vpop.f32.mrf.mxu1  ;;  %v1415_v23 = vpop.f32.mrf.mxu0  ;;  %v1655_v52 = vmax.f32 %v1314_v58, 0.0  ;;  %v1695_v53 = vpack.c.bf16 %v1659_v7, %v1657_v3 }
 0x295   :  { %v1416_v30 = vadd.f32 %v1415_v23, %v3091_v36 }
 0x296   :  { %v1661_v51 = vmax.f32 %v1322_v8, 0.0  ;;  %v1693_v61 = vpack.c.bf16 %v1655_v52, %v1653_v32 }
 0x29b   :  { %v1323_v48 = vpop.f32.mrf.mxu3  ;;  %v1237_v45 = vpop.f32.mrf.mxu2 }
 0x29c   :  { %v1238_v4 = vadd.f32 %v1237_v45, %v3091_v36  ;;  %v1324_v56 = vadd.f32 %v1323_v48, %v1235_v34  ;;  %v1504_v48 = vpop.f32.mrf.mxu1  ;;  %v1417_v45 = vpop.f32.mrf.mxu0  ;;  %v1406_v36 = vadd.f32 %v2979_v41, %v3096_v54 }
 0x29d   :  { %v1418_v46 = vadd.f32 %v1417_v45, %v3093_v37  ;;  %1744 = vmatmul.bf16.vlgmr.msrb.gmra.mxu2 %v1706_v9 }
 0x29e   :  { %v1663_v47 = vmax.f32 %v1324_v56, 0.0  ;;  %v1495_v57 = vadd.f32 %v2981_v50, %v1406_v36 }
 0x2a0   :  { %v1697_v14 = vpack.c.bf16 %v1663_v47, %v1661_v51  ;;  %v1658_v41 = vmax.f32 %v1495_v57, 0.0 }
 0x2a3   :  { %v1326_v15 = vpop.f32.mrf.mxu3  ;;  %v1239_v10 = vpop.f32.mrf.mxu2 }
 0x2a4   :  { %v1240_v39 = vadd.f32 %v1239_v10, %v3093_v37  ;;  %v1327_v24 = vadd.f32 %v1326_v15, %v1238_v4  ;;  %v1506_v12 = vpop.f32.mrf.mxu1  ;;  %v1413_v10 = vadd.f32 %v1412_v44, %v3092_v13  ;;  %v1505_v4 = vadd.f32 %v1504_v48, %v1416_v30  ;;  %v1707_v13 = vld [vmem:[#allocation1 + $0x9] sm:$0xff] }
 0x2a5   :  { %v1507_v15 = vadd.f32 %v1506_v12, %v1418_v46 }
 0x2a6   :  { %v1665_v35 = vmax.f32 %v1327_v24, 0.0  ;;  %v1502_v34 = vadd.f32 %v1501_v1, %v1413_v10  ;;  %v1408_v24 = vadd.f32 %v1407_v49, %v3095_v27  ;;  %v1492_v49 = vadd.f32 %v2977_v28, %v1403_v6 }
 0x2a8   :  { %v1497_v37 = vadd.f32 %v2983_v19, %v1408_v24  ;;  %v1656_v19 = vmax.f32 %v1492_v49, 0.0 }
 0x2ab   :  { %v1328_v11 = vpop.f32.mrf.mxu3 }
 0x2ac   :  { %v1329_v60 = vadd.f32 %v1328_v11, %v1240_v39  ;;  %v1668_v39 = vmax.f32 %v1507_v15, 0.0  ;;  %v1666_v11 = vmax.f32 %v1505_v4, 0.0 }
 0x2ae   :  { %v1667_v31 = vmax.f32 %v1329_v60, 0.0  ;;  %v1700_v62 = vpack.c.bf16 %v1668_v39, %v1666_v11  ;;  %v1654_v60 = vmax.f32 %v2970_v42, 0.0  ;;  %v1703_v42 = vstv %s3028_s6 }
 0x2b0   :  { %v1699_v20 = vpack.c.bf16 %v1667_v31, %v1665_v35 }
 0x2b2   :  { %1723 = vmatpush.bf16.msra.mxu3 %v1699_v20 }
 0x2b6   :  { %1724 = vmatpush.bf16.msra.mxu3 %v1697_v14 }
 0x2ba   :  { %1725 = vmatpush.bf16.msra.mxu3 %v1695_v53 }
 0x2be   :  { %1726 = vmatpush.bf16.msra.mxu3 %v1693_v61 }
 0x2c2   :  { %1727 = vmatpush.bf16.msra.mxu3 %v2972_v16  ;;  %v1500_v16 = vadd.f32 %v1499_v29, %v1411_v2  ;;  %v1660_v29 = vmax.f32 %v1497_v37, 0.0 }
 0x2c4   :  { %v1696_v56 = vpack.c.bf16 %v1660_v29, %v1658_v41 }
 0x2c6   :  { %1728 = vmatpush.bf16.msra.mxu3 %v2959_v55  ;;  %v1664_v55 = vmax.f32 %v1502_v34, 0.0 }
 0x2ca   :  { %1729 = vmatpush.bf16.msra.mxu3 %v2947_v59  ;;  %v1662_v59 = vmax.f32 %v1500_v16, 0.0 }
 0x2cc   :  { %v1698_v44 = vpack.c.bf16 %v1664_v55, %v1662_v59 }
 0x2ce   :  { %1730 = vmatpush.bf16.msra.mxu3 %v2921_v63  ;;  %v1694_v63 = vpack.c.bf16 %v1656_v19, %v1654_v60 }
 0x2d1   :  { %1731 = vmatmul.bf16.vlgmr.msra.gmra.mxu3 %v1707_v13 }
 0x2d2   :  { %1749 = vmatpush.bf16.msrb.mxu3 %v1700_v62 }
 0x2d6   :  { %1750 = vmatpush.bf16.msrb.mxu3 %v1698_v44 }
 0x2da   :  { %1751 = vmatpush.bf16.msrb.mxu3 %v1696_v56 }
 0x2de   :  { %1752 = vmatpush.bf16.msrb.mxu3 %v1694_v63 }
 0x2e2   :  { %1753 = vmatpush.bf16.msrb.mxu3 %v2966_v22  ;;  %v1768_v22 = vlaneseq }
 0x2e4   :  { %vm1770_vm3 = vcmp.lt.s32.totalorder %v1768_v22, 256 }
 0x2e6   :  { %1754 = vmatpush.bf16.msrb.mxu3 %v2955_v21 }
 0x2ea   :  { %1755 = vmatpush.bf16.msrb.mxu3 %v2937_v38 }
 0x2ee   :  { %1756 = vmatpush.bf16.msrb.mxu3 %v2918_v17 }
 0x2f1   :  { %1757 = vmatmul.bf16.vlgmr.msrb.gmra.mxu3 %v1707_v13 }
 0x310   :  { %v1719_v43 = vpop.f32.mrf.mxu2 }
 0x311   :  { %v1720_v35 = vadd.f32 %v1719_v43, %v1703_v42 }
 0x318   :  { %v1721_v28 = vpop.f32.mrf.mxu2 }
 0x320   :  { %v1745_v50 = vpop.f32.mrf.mxu2 }
 0x321   :  { %v1746_v1 = vadd.f32 %v1745_v50, %v1703_v42 }
 0x328   :  { %v1747_v27 = vpop.f32.mrf.mxu2 }
 0x354   :  { %v1732_v18 = vpop.f32.mrf.mxu3 }
 0x355   :  { %v1733_v17 = vadd.f32 %v1732_v18, %v1720_v35 }
 0x35c   :  { %v1734_v8 = vpop.f32.mrf.mxu3 }
 0x374   :  { %v1758_v31 = vpop.f32.mrf.mxu3 }
 0x375   :  { %v1759_v21 = vadd.f32 %v1758_v31, %v1746_v1 }
 0x377   :  { %v1764_v38 = vrot.slane %v1759_v21, 7 }
 0x379   :  { %v1766_v26 = vsel %vm1765_vm2, %v1733_v17, %v1764_v38 }
 0x37a   :  { %1772 = vst.msk [vmem:[#allocation3] sm:$0x3] %vm1770_vm3, %v1766_v26 }
 0x37b   :  { %1783 = dma.vmem_to_hbm [thread:$0]  %s1779_s21, 32, %s1781_s24, [#allocation4]  }
 0x37c   :  { %v1760_v54 = vpop.f32.mrf.mxu3 }
 0x37d   :  { %2094 = dma.done.wait [#allocation4], 32  }
 0x37e   :  { %2095 = vsyncadd [#allocation4], 4294967264 }
 0x37f   :  { %1788 = vsyncpa [#allocation4], 1 }

</bundles_post_ra>
